<compile_context>
chip_gen: v7x
topology: tpu7x:2x2x1
jax: 0.10.0
libtpu: 0.0.40
codegen_flags: <defaults>
</compile_context>

<pallas_src>
import math

import jax
import jax.numpy as jnp
from jax.experimental import pallas as pl
from jax.experimental.pallas import tpu as pltpu

HID = 256
CLIP_MAX = 3.0
LN_EPS = 1e-5                      # PyTorch nn.LayerNorm default eps
GAMMA = 0.98
INV_GAMMA = 1.0 / GAMMA
LOG_GAMMA = math.log(GAMMA)
MATMUL_DTYPE = jnp.bfloat16        # MXU operand dtype for w1/w2/w3 (f32 accumulate)

PARAM_ORDER = ("n1w", "n1b", "w1", "b1",
               "n2w", "n2b", "w2", "b2",
               "n3w", "n3b", "w3", "b3",
               "wm", "wa", "bm", "ba")


def _round_up(n, m):
    return ((n + m - 1) // m) * m


def _layernorm(x, w, b):
    # Single-pass statistics: var = E[x^2] - mu^2 (one XLU reduce pair).
    mu = jnp.mean(x, axis=-1, keepdims=True)
    ms = jnp.mean(x * x, axis=-1, keepdims=True)
    var = ms - mu * mu
    return (x - mu) * jax.lax.rsqrt(var + LN_EPS) * w + b


def _linear_relu(h, w_ref, b_ref):
    # bf16 operands on the MXU, f32 accumulate; bias-add + ReLU on the VPU.
    y = jnp.dot(h.astype(w_ref.dtype), w_ref[0],
                preferred_element_type=jnp.float32) + b_ref[0]
    return jnp.maximum(y, 0.0)


def _dual_critic_kernel(xa_ref, dist_ref,
                        n1w_ref, n1b_ref, w1_ref, b1_ref,
                        n2w_ref, n2b_ref, w2_ref, b2_ref,
                        n3w_ref, n3b_ref, w3_ref, b3_ref,
                        wm_ref, wa_ref, bm_ref, ba_ref,
                        q_ref):
    c = pl.program_id(0)                       # critic index (outer grid axis)
    x = xa_ref[...]                            # (TILE_B, D) f32

    h = _layernorm(x, n1w_ref[0], n1b_ref[0])  # norm1
    h = jnp.clip(h, -CLIP_MAX, CLIP_MAX)
    h = _linear_relu(h, w1_ref, b1_ref)        # fc1 + relu
    h = _layernorm(h, n2w_ref[0], n2b_ref[0])  # norm2
    h = _linear_relu(h, w2_ref, b2_ref)        # fc2 + relu
    h = _layernorm(h, n3w_ref[0], n3b_ref[0])  # norm3
    h = _linear_relu(h, w3_ref, b3_ref)        # fc3 + relu

    # (256 -> 1) heads as VPU multiply + lane reduce (avoid N=1 MXU matmuls).
    mult = jnp.sum(h * wm_ref[0], axis=-1, keepdims=True) + bm_ref[c]   # (TILE_B, 1)
    add = jnp.sum(h * wa_ref[0], axis=-1, keepdims=True) + ba_ref[c]    # (TILE_B, 1)

    # PyTorch broadcast: dist (1, Bc) x mult (TILE_B, 1) -> (TILE_B, Bc).
    z = jnp.maximum(mult * dist_ref[...], 0.0)
    q = INV_GAMMA * (jnp.exp(z * LOG_GAMMA) - 1.0) + add   # gamma**z == exp(z*ln(g))
    q_ref[0] = q.astype(q_ref.dtype)


def dual_value_prior_critic_forward(x, actions, params, max_action, goal_dim,
                                    tile_b=256):
    """min(q1, q2) of the two value_prior_critic networks (PyTorch forward)."""
    x = x.astype(jnp.float32)
    actions = actions.astype(jnp.float32)
    B = x.shape[0]

    # --- cheap glue in plain JAX: dist + concat(actions / max_action) ---
    g = x[..., -goal_dim:]
    ag = x[..., -2 * goal_dim:-goal_dim]
    dist = jnp.sqrt(jnp.sum((g - ag) ** 2, axis=-1)) * 10.0          # (B,)
    xa = jnp.concatenate([x, actions / max_action], axis=1)          # (B, D)
    D = xa.shape[1]

    # --- tiling: batch rows -> TILE_B (MXU M dim); output cols -> 128 lanes ---
    TILE_B = min(tile_b, _round_up(B, 8))
    B_rpad = _round_up(B, TILE_B)
    B_cpad = _round_up(B, 128)

    xa_p = jnp.zeros((B_rpad, D), jnp.float32).at[:B, :].set(xa)
    dist_p = jnp.zeros((1, B_cpad), jnp.float32).at[0, :B].set(dist)

    # Critic axis outer so each critic's weights are DMA'd exactly once and
    # stay resident while the batch axis streams through.
    grid = (2, B_rpad // TILE_B)

    def crit(shape):  # per-critic parameter block, constant across batch tiles
        return pl.BlockSpec(shape, lambda c, i: (c,) + (0,) * (len(shape) - 1))

    in_specs = [
        pl.BlockSpec((TILE_B, D), lambda c, i: (i, 0)),        # xa tile
        pl.BlockSpec((1, B_cpad), lambda c, i: (0, 0)),        # dist (full row)
        crit((1, 1, D)), crit((1, 1, D)),                      # n1w, n1b
        crit((1, D, HID)), crit((1, 1, HID)),                  # w1, b1
        crit((1, 1, HID)), crit((1, 1, HID)),                  # n2w, n2b
        crit((1, HID, HID)), crit((1, 1, HID)),                # w2, b2
        crit((1, 1, HID)), crit((1, 1, HID)),                  # n3w, n3b
        crit((1, HID, HID)), crit((1, 1, HID)),                # w3, b3
        crit((1, 1, HID)), crit((1, 1, HID)),                  # wm, wa
        pl.BlockSpec(memory_space=pltpu.MemorySpace.SMEM),     # bm (2,) scalars
        pl.BlockSpec(memory_space=pltpu.MemorySpace.SMEM),     # ba (2,) scalars
    ]
    out_specs = pl.BlockSpec((1, TILE_B, B_cpad), lambda c, i: (c, i, 0))

    # Advisory cost estimate so XLA schedules the custom call sensibly.
    mm_flops = 2 * B_rpad * 2 * (D * HID + 2 * HID * HID)
    vpu_flops = 2 * B_rpad * (12 * HID + 6 * D) + 2 * B_rpad * B_cpad * 5
    weight_bytes = sum(int(v.size) * v.dtype.itemsize for v in params.values())
    cost = pl.CostEstimate(
        flops=int(mm_flops + vpu_flops),
        transcendentals=int(2 * B_rpad * B_cpad + 6 * B_rpad),
        bytes_accessed=int(xa_p.size * 4 + dist_p.size * 4 + weight_bytes
                           + 2 * B_rpad * B_cpad * 4),
    )

    q_pair = pl.pallas_call(
        _dual_critic_kernel,
        out_shape=jax.ShapeDtypeStruct((2, B_rpad, B_cpad), jnp.float32),
        grid_spec=pltpu.PrefetchScalarGridSpec(
            num_scalar_prefetch=0,
            grid=grid,
            in_specs=in_specs,
            out_specs=out_specs),
        compiler_params=pltpu.CompilerParams(
            dimension_semantics=("parallel", "parallel")),
        cost_estimate=cost,
    )(xa_p, dist_p, *[params[n] for n in PARAM_ORDER])

    q_pair = q_pair[:, :B, :B]               # drop row/col padding
    return jnp.minimum(q_pair[0], q_pair[1])


def init_params(key, in_dim):
    """Deterministic synthetic params; leading axis of 2 = the two critics."""
    ks = jax.random.split(key, 16)
    p = {}
    p["n1w"] = 1.0 + 0.1 * jax.random.normal(ks[0], (2, 1, in_dim), jnp.float32)
    p["n1b"] = 0.1 * jax.random.normal(ks[1], (2, 1, in_dim), jnp.float32)
    p["w1"] = (jax.random.normal(ks[2], (2, in_dim, HID), jnp.float32)
               / math.sqrt(in_dim)).astype(MATMUL_DTYPE)
    p["b1"] = 0.1 * jax.random.normal(ks[3], (2, 1, HID), jnp.float32)
    p["n2w"] = 1.0 + 0.1 * jax.random.normal(ks[4], (2, 1, HID), jnp.float32)
    p["n2b"] = 0.1 * jax.random.normal(ks[5], (2, 1, HID), jnp.float32)
    p["w2"] = (jax.random.normal(ks[6], (2, HID, HID), jnp.float32)
               / math.sqrt(HID)).astype(MATMUL_DTYPE)
    p["b2"] = 0.1 * jax.random.normal(ks[7], (2, 1, HID), jnp.float32)
    p["n3w"] = 1.0 + 0.1 * jax.random.normal(ks[8], (2, 1, HID), jnp.float32)
    p["n3b"] = 0.1 * jax.random.normal(ks[9], (2, 1, HID), jnp.float32)
    p["w3"] = (jax.random.normal(ks[10], (2, HID, HID), jnp.float32)
               / math.sqrt(HID)).astype(MATMUL_DTYPE)
    p["b3"] = 0.1 * jax.random.normal(ks[11], (2, 1, HID), jnp.float32)
    p["wm"] = jax.random.normal(ks[12], (2, 1, HID), jnp.float32) / math.sqrt(HID)
    p["bm"] = 0.1 * jax.random.normal(ks[13], (2,), jnp.float32)
    p["wa"] = jax.random.normal(ks[14], (2, 1, HID), jnp.float32) / math.sqrt(HID)
    p["ba"] = 0.1 * jax.random.normal(ks[15], (2,), jnp.float32)
    return p


def dual_value_prior_critic_reference(x, actions, params, max_action, goal_dim):
    """Pure-JAX reference mirroring the PyTorch forward (incl. broadcast)."""
    x = x.astype(jnp.float32)
    actions = actions.astype(jnp.float32)
    g = x[..., -goal_dim:]
    ag = x[..., -2 * goal_dim:-goal_dim]
    dist = jnp.sqrt(jnp.sum((g - ag) ** 2, axis=-1)) * 10.0          # (B,)
    xa = jnp.concatenate([x, actions / max_action], axis=1)

    def ln(v, w, b):
        mu = jnp.mean(v, axis=-1, keepdims=True)
        var = jnp.mean((v - mu) ** 2, axis=-1, keepdims=True)
        return (v - mu) * jax.lax.rsqrt(var + LN_EPS) * w + b

    def one_critic(c):
        h = ln(xa, params["n1w"][c], params["n1b"][c])
        h = jnp.clip(h, -CLIP_MAX, CLIP_MAX)
        h = jax.nn.relu(jnp.dot(h.astype(params["w1"].dtype), params["w1"][c],
                                preferred_element_type=jnp.float32) + params["b1"][c])
        h = ln(h, params["n2w"][c], params["n2b"][c])
        h = jax.nn.relu(jnp.dot(h.astype(params["w2"].dtype), params["w2"][c],
                                preferred_element_type=jnp.float32) + params["b2"][c])
        h = ln(h, params["n3w"][c], params["n3b"][c])
        h = jax.nn.relu(jnp.dot(h.astype(params["w3"].dtype), params["w3"][c],
                                preferred_element_type=jnp.float32) + params["b3"][c])
        mult = h @ params["wm"][c].T + params["bm"][c]               # (B, 1)
        add = h @ params["wa"][c].T + params["ba"][c]                # (B, 1)
        # torch broadcast: dist (B,) * mult (B,1) -> (B,B)
        return INV_GAMMA * (GAMMA ** jax.nn.relu(dist * mult) - 1.0) + add

    return jnp.minimum(one_critic(0), one_critic(1))


if __name__ == "__main__":
    # env_params: obs=10, goal=3, action=4, action_max=1.0
    OBS, GOAL, ACT = 10, 3, 4
    MAX_ACTION = 1.0
    IN_DIM = OBS + 2 * GOAL + ACT      # 20
    B = 24                             # small demo batch (3 tiles of 8)

    key = jax.random.PRNGKey(0)
    k_x, k_a, k_p = jax.random.split(key, 3)
    x = jax.random.normal(k_x, (B, OBS + 2 * GOAL), jnp.float32)     # (24, 16)
    actions = jax.random.normal(k_a, (B, ACT), jnp.float32)          # (24, 4)
    params = init_params(k_p, IN_DIM)

    # tile_b=8 exercises the (critic, batch-tile) grid at demo scale; the
    # default tile_b=256 is the production MXU-sized tile.
    q = dual_value_prior_critic_forward(x, actions, params, MAX_ACTION, GOAL,
                                        tile_b=8)
    q = jax.block_until_ready(q)

    q_ref = dual_value_prior_critic_reference(x, actions, params, MAX_ACTION, GOAL)
    assert q.shape == (B, B), q.shape            # PyTorch broadcast semantics
    assert jnp.allclose(q, q_ref, atol=1e-3, rtol=1e-3), (
        float(jnp.max(jnp.abs(q - q_ref))))

    print("KERNEL_OK")
</pallas_src>

<mosaic_0001>
module attributes {stable_mosaic.version = 11 : i64} {
  func.func @_dual_critic_kernel(%arg0: i32, %arg1: i32, %arg2: memref<8x20xf32, #tpu.memory_space<vmem>>, %arg3: memref<1x128xf32, #tpu.memory_space<vmem>>, %arg4: memref<1x1x20xf32, #tpu.memory_space<vmem>>, %arg5: memref<1x1x20xf32, #tpu.memory_space<vmem>>, %arg6: memref<1x20x256xbf16, #tpu.memory_space<vmem>>, %arg7: memref<1x1x256xf32, #tpu.memory_space<vmem>>, %arg8: memref<1x1x256xf32, #tpu.memory_space<vmem>>, %arg9: memref<1x1x256xf32, #tpu.memory_space<vmem>>, %arg10: memref<1x256x256xbf16, #tpu.memory_space<vmem>>, %arg11: memref<1x1x256xf32, #tpu.memory_space<vmem>>, %arg12: memref<1x1x256xf32, #tpu.memory_space<vmem>>, %arg13: memref<1x1x256xf32, #tpu.memory_space<vmem>>, %arg14: memref<1x256x256xbf16, #tpu.memory_space<vmem>>, %arg15: memref<1x1x256xf32, #tpu.memory_space<vmem>>, %arg16: memref<1x1x256xf32, #tpu.memory_space<vmem>>, %arg17: memref<1x1x256xf32, #tpu.memory_space<vmem>>, %arg18: memref<2xf32, #tpu.memory_space<smem>>, %arg19: memref<2xf32, #tpu.memory_space<smem>>, %arg20: memref<1x8x128xf32, #tpu.memory_space<vmem>>) attributes {dimension_semantics = [#tpu.dimension_semantics<parallel>, #tpu.dimension_semantics<parallel>], iteration_bounds = array<i64: 2, 3>, scalar_prefetch = 0 : i64, scratch_operands = 0 : i64, tpu.core_type = #tpu.core_type<tc>, window_params = [{transform_indices = @transform_0, window_bounds = array<i64: 8, 20>}, {pipeline_mode = #tpu.pipeline_mode<synchronous>, transform_indices = @transform_1, window_bounds = array<i64: 1, 128>}, {transform_indices = @transform_2, window_bounds = array<i64: 1, 1, 20>}, {transform_indices = @transform_3, window_bounds = array<i64: 1, 1, 20>}, {transform_indices = @transform_4, window_bounds = array<i64: 1, 20, 256>}, {transform_indices = @transform_5, window_bounds = array<i64: 1, 1, 256>}, {transform_indices = @transform_6, window_bounds = array<i64: 1, 1, 256>}, {transform_indices = @transform_7, window_bounds = array<i64: 1, 1, 256>}, {transform_indices = @transform_8, window_bounds = array<i64: 1, 256, 256>}, {transform_indices = @transform_9, window_bounds = array<i64: 1, 1, 256>}, {transform_indices = @transform_10, window_bounds = array<i64: 1, 1, 256>}, {transform_indices = @transform_11, window_bounds = array<i64: 1, 1, 256>}, {transform_indices = @transform_12, window_bounds = array<i64: 1, 256, 256>}, {transform_indices = @transform_13, window_bounds = array<i64: 1, 1, 256>}, {transform_indices = @transform_14, window_bounds = array<i64: 1, 1, 256>}, {transform_indices = @transform_15, window_bounds = array<i64: 1, 1, 256>}, {transform_indices = @transform_16, window_bounds = array<i64: 2>}, {transform_indices = @transform_17, window_bounds = array<i64: 2>}, {transform_indices = @transform_18, window_bounds = array<i64: 1, 8, 128>}]} {
    %c0 = arith.constant 0 : index
    %c0_0 = arith.constant 0 : index
    %0 = vector.load %arg2[%c0, %c0_0] : memref<8x20xf32, #tpu.memory_space<vmem>>, vector<8x20xf32>
    %c0_1 = arith.constant 0 : index
    %c0_2 = arith.constant 0 : index
    %c0_3 = arith.constant 0 : index
    %1 = vector.load %arg4[%c0_1, %c0_2, %c0_3] : memref<1x1x20xf32, #tpu.memory_space<vmem>>, vector<1x1x20xf32>
    %2 = vector.shape_cast %1 : vector<1x1x20xf32> to vector<1x20xf32>
    %c0_4 = arith.constant 0 : index
    %c0_5 = arith.constant 0 : index
    %c0_6 = arith.constant 0 : index
    %3 = vector.load %arg5[%c0_4, %c0_5, %c0_6] : memref<1x1x20xf32, #tpu.memory_space<vmem>>, vector<1x1x20xf32>
    %4 = vector.shape_cast %3 : vector<1x1x20xf32> to vector<1x20xf32>
    %cst = arith.constant dense<0.000000e+00> : vector<8xf32>
    %5 = vector.multi_reduction <add>, %0, %cst [1] : vector<8x20xf32> to vector<8xf32>
    %6 = vector.shape_cast %5 : vector<8xf32> to vector<8x1xf32>
    %cst_7 = arith.constant 2.000000e+01 : f32
    %7 = vector.broadcast %cst_7 : f32 to vector<8x1xf32>
    %8 = arith.divf %6, %7 : vector<8x1xf32>
    %9 = arith.mulf %0, %0 : vector<8x20xf32>
    %cst_8 = arith.constant dense<0.000000e+00> : vector<8xf32>
    %10 = vector.multi_reduction <add>, %9, %cst_8 [1] : vector<8x20xf32> to vector<8xf32>
    %11 = vector.shape_cast %10 : vector<8xf32> to vector<8x1xf32>
    %cst_9 = arith.constant 2.000000e+01 : f32
    %12 = vector.broadcast %cst_9 : f32 to vector<8x1xf32>
    %13 = arith.divf %11, %12 : vector<8x1xf32>
    %14 = arith.mulf %8, %8 : vector<8x1xf32>
    %15 = arith.subf %13, %14 : vector<8x1xf32>
    %16 = vector.broadcast %8 : vector<8x1xf32> to vector<8x20xf32>
    %17 = arith.subf %0, %16 : vector<8x20xf32>
    %cst_10 = arith.constant 9.99999974E-6 : f32
    %18 = vector.broadcast %cst_10 : f32 to vector<8x1xf32>
    %19 = arith.addf %15, %18 : vector<8x1xf32>
    %20 = math.rsqrt %19 : vector<8x1xf32>
    %21 = vector.broadcast %20 : vector<8x1xf32> to vector<8x20xf32>
    %22 = arith.mulf %17, %21 : vector<8x20xf32>
    %23 = vector.broadcast %2 : vector<1x20xf32> to vector<8x20xf32>
    %24 = arith.mulf %22, %23 : vector<8x20xf32>
    %25 = vector.broadcast %4 : vector<1x20xf32> to vector<8x20xf32>
    %26 = arith.addf %24, %25 : vector<8x20xf32>
    %cst_11 = arith.constant -3.000000e+00 : f32
    %cst_12 = arith.constant 3.000000e+00 : f32
    %27 = vector.broadcast %cst_11 : f32 to vector<8x20xf32>
    %28 = arith.maximumf %27, %26 : vector<8x20xf32>
    %29 = vector.broadcast %cst_12 : f32 to vector<8x20xf32>
    %30 = arith.minimumf %29, %28 : vector<8x20xf32>
    %31 = arith.truncf %30 : vector<8x20xf32> to vector<8x20xbf16>
    %c0_13 = arith.constant 0 : index
    %c0_14 = arith.constant 0 : index
    %c0_15 = arith.constant 0 : index
    %32 = vector.load %arg6[%c0_13, %c0_14, %c0_15] : memref<1x20x256xbf16, #tpu.memory_space<vmem>>, vector<1x20x256xbf16>
    %33 = vector.shape_cast %32 : vector<1x20x256xbf16> to vector<20x256xbf16>
    %cst_16 = arith.constant dense<0.000000e+00> : vector<8x256xf32>
    %34 = tpu.matmul %31, %33, %cst_16 {dimension_numbers = #tpu.dot_dimension_numbers<[1], [0], [0], [1], [0, 0, 1, 1], [], []>} : vector<8x20xbf16>, vector<20x256xbf16>, vector<8x256xf32> -> vector<8x256xf32>
    %c0_17 = arith.constant 0 : index
    %c0_18 = arith.constant 0 : index
    %c0_19 = arith.constant 0 : index
    %35 = vector.load %arg7[%c0_17, %c0_18, %c0_19] : memref<1x1x256xf32, #tpu.memory_space<vmem>>, vector<1x1x256xf32>
    %36 = vector.shape_cast %35 : vector<1x1x256xf32> to vector<1x256xf32>
    %37 = vector.broadcast %36 : vector<1x256xf32> to vector<8x256xf32>
    %38 = arith.addf %34, %37 : vector<8x256xf32>
    %cst_20 = arith.constant 0.000000e+00 : f32
    %39 = vector.broadcast %cst_20 : f32 to vector<8x256xf32>
    %40 = arith.maximumf %38, %39 : vector<8x256xf32>
    %c0_21 = arith.constant 0 : index
    %c0_22 = arith.constant 0 : index
    %c0_23 = arith.constant 0 : index
    %41 = vector.load %arg8[%c0_21, %c0_22, %c0_23] : memref<1x1x256xf32, #tpu.memory_space<vmem>>, vector<1x1x256xf32>
    %42 = vector.shape_cast %41 : vector<1x1x256xf32> to vector<1x256xf32>
    %c0_24 = arith.constant 0 : index
    %c0_25 = arith.constant 0 : index
    %c0_26 = arith.constant 0 : index
    %43 = vector.load %arg9[%c0_24, %c0_25, %c0_26] : memref<1x1x256xf32, #tpu.memory_space<vmem>>, vector<1x1x256xf32>
    %44 = vector.shape_cast %43 : vector<1x1x256xf32> to vector<1x256xf32>
    %cst_27 = arith.constant dense<0.000000e+00> : vector<8xf32>
    %45 = vector.multi_reduction <add>, %40, %cst_27 [1] : vector<8x256xf32> to vector<8xf32>
    %46 = vector.shape_cast %45 : vector<8xf32> to vector<8x1xf32>
    %cst_28 = arith.constant 2.560000e+02 : f32
    %47 = vector.broadcast %cst_28 : f32 to vector<8x1xf32>
    %48 = arith.divf %46, %47 : vector<8x1xf32>
    %49 = arith.mulf %40, %40 : vector<8x256xf32>
    %cst_29 = arith.constant dense<0.000000e+00> : vector<8xf32>
    %50 = vector.multi_reduction <add>, %49, %cst_29 [1] : vector<8x256xf32> to vector<8xf32>
    %51 = vector.shape_cast %50 : vector<8xf32> to vector<8x1xf32>
    %cst_30 = arith.constant 2.560000e+02 : f32
    %52 = vector.broadcast %cst_30 : f32 to vector<8x1xf32>
    %53 = arith.divf %51, %52 : vector<8x1xf32>
    %54 = arith.mulf %48, %48 : vector<8x1xf32>
    %55 = arith.subf %53, %54 : vector<8x1xf32>
    %56 = vector.broadcast %48 : vector<8x1xf32> to vector<8x256xf32>
    %57 = arith.subf %40, %56 : vector<8x256xf32>
    %cst_31 = arith.constant 9.99999974E-6 : f32
    %58 = vector.broadcast %cst_31 : f32 to vector<8x1xf32>
    %59 = arith.addf %55, %58 : vector<8x1xf32>
    %60 = math.rsqrt %59 : vector<8x1xf32>
    %61 = vector.broadcast %60 : vector<8x1xf32> to vector<8x256xf32>
    %62 = arith.mulf %57, %61 : vector<8x256xf32>
    %63 = vector.broadcast %42 : vector<1x256xf32> to vector<8x256xf32>
    %64 = arith.mulf %62, %63 : vector<8x256xf32>
    %65 = vector.broadcast %44 : vector<1x256xf32> to vector<8x256xf32>
    %66 = arith.addf %64, %65 : vector<8x256xf32>
    %67 = arith.truncf %66 : vector<8x256xf32> to vector<8x256xbf16>
    %c0_32 = arith.constant 0 : index
    %c0_33 = arith.constant 0 : index
    %c0_34 = arith.constant 0 : index
    %68 = vector.load %arg10[%c0_32, %c0_33, %c0_34] : memref<1x256x256xbf16, #tpu.memory_space<vmem>>, vector<1x256x256xbf16>
    %69 = vector.shape_cast %68 : vector<1x256x256xbf16> to vector<256x256xbf16>
    %cst_35 = arith.constant dense<0.000000e+00> : vector<8x256xf32>
    %70 = tpu.matmul %67, %69, %cst_35 {dimension_numbers = #tpu.dot_dimension_numbers<[1], [0], [0], [1], [0, 0, 1, 1], [], []>} : vector<8x256xbf16>, vector<256x256xbf16>, vector<8x256xf32> -> vector<8x256xf32>
    %c0_36 = arith.constant 0 : index
    %c0_37 = arith.constant 0 : index
    %c0_38 = arith.constant 0 : index
    %71 = vector.load %arg11[%c0_36, %c0_37, %c0_38] : memref<1x1x256xf32, #tpu.memory_space<vmem>>, vector<1x1x256xf32>
    %72 = vector.shape_cast %71 : vector<1x1x256xf32> to vector<1x256xf32>
    %73 = vector.broadcast %72 : vector<1x256xf32> to vector<8x256xf32>
    %74 = arith.addf %70, %73 : vector<8x256xf32>
    %cst_39 = arith.constant 0.000000e+00 : f32
    %75 = vector.broadcast %cst_39 : f32 to vector<8x256xf32>
    %76 = arith.maximumf %74, %75 : vector<8x256xf32>
    %c0_40 = arith.constant 0 : index
    %c0_41 = arith.constant 0 : index
    %c0_42 = arith.constant 0 : index
    %77 = vector.load %arg12[%c0_40, %c0_41, %c0_42] : memref<1x1x256xf32, #tpu.memory_space<vmem>>, vector<1x1x256xf32>
    %78 = vector.shape_cast %77 : vector<1x1x256xf32> to vector<1x256xf32>
    %c0_43 = arith.constant 0 : index
    %c0_44 = arith.constant 0 : index
    %c0_45 = arith.constant 0 : index
    %79 = vector.load %arg13[%c0_43, %c0_44, %c0_45] : memref<1x1x256xf32, #tpu.memory_space<vmem>>, vector<1x1x256xf32>
    %80 = vector.shape_cast %79 : vector<1x1x256xf32> to vector<1x256xf32>
    %cst_46 = arith.constant dense<0.000000e+00> : vector<8xf32>
    %81 = vector.multi_reduction <add>, %76, %cst_46 [1] : vector<8x256xf32> to vector<8xf32>
    %82 = vector.shape_cast %81 : vector<8xf32> to vector<8x1xf32>
    %cst_47 = arith.constant 2.560000e+02 : f32
    %83 = vector.broadcast %cst_47 : f32 to vector<8x1xf32>
    %84 = arith.divf %82, %83 : vector<8x1xf32>
    %85 = arith.mulf %76, %76 : vector<8x256xf32>
    %cst_48 = arith.constant dense<0.000000e+00> : vector<8xf32>
    %86 = vector.multi_reduction <add>, %85, %cst_48 [1] : vector<8x256xf32> to vector<8xf32>
    %87 = vector.shape_cast %86 : vector<8xf32> to vector<8x1xf32>
    %cst_49 = arith.constant 2.560000e+02 : f32
    %88 = vector.broadcast %cst_49 : f32 to vector<8x1xf32>
    %89 = arith.divf %87, %88 : vector<8x1xf32>
    %90 = arith.mulf %84, %84 : vector<8x1xf32>
    %91 = arith.subf %89, %90 : vector<8x1xf32>
    %92 = vector.broadcast %84 : vector<8x1xf32> to vector<8x256xf32>
    %93 = arith.subf %76, %92 : vector<8x256xf32>
    %cst_50 = arith.constant 9.99999974E-6 : f32
    %94 = vector.broadcast %cst_50 : f32 to vector<8x1xf32>
    %95 = arith.addf %91, %94 : vector<8x1xf32>
    %96 = math.rsqrt %95 : vector<8x1xf32>
    %97 = vector.broadcast %96 : vector<8x1xf32> to vector<8x256xf32>
    %98 = arith.mulf %93, %97 : vector<8x256xf32>
    %99 = vector.broadcast %78 : vector<1x256xf32> to vector<8x256xf32>
    %100 = arith.mulf %98, %99 : vector<8x256xf32>
    %101 = vector.broadcast %80 : vector<1x256xf32> to vector<8x256xf32>
    %102 = arith.addf %100, %101 : vector<8x256xf32>
    %103 = arith.truncf %102 : vector<8x256xf32> to vector<8x256xbf16>
    %c0_51 = arith.constant 0 : index
    %c0_52 = arith.constant 0 : index
    %c0_53 = arith.constant 0 : index
    %104 = vector.load %arg14[%c0_51, %c0_52, %c0_53] : memref<1x256x256xbf16, #tpu.memory_space<vmem>>, vector<1x256x256xbf16>
    %105 = vector.shape_cast %104 : vector<1x256x256xbf16> to vector<256x256xbf16>
    %cst_54 = arith.constant dense<0.000000e+00> : vector<8x256xf32>
    %106 = tpu.matmul %103, %105, %cst_54 {dimension_numbers = #tpu.dot_dimension_numbers<[1], [0], [0], [1], [0, 0, 1, 1], [], []>} : vector<8x256xbf16>, vector<256x256xbf16>, vector<8x256xf32> -> vector<8x256xf32>
    %c0_55 = arith.constant 0 : index
    %c0_56 = arith.constant 0 : index
    %c0_57 = arith.constant 0 : index
    %107 = vector.load %arg15[%c0_55, %c0_56, %c0_57] : memref<1x1x256xf32, #tpu.memory_space<vmem>>, vector<1x1x256xf32>
    %108 = vector.shape_cast %107 : vector<1x1x256xf32> to vector<1x256xf32>
    %109 = vector.broadcast %108 : vector<1x256xf32> to vector<8x256xf32>
    %110 = arith.addf %106, %109 : vector<8x256xf32>
    %cst_58 = arith.constant 0.000000e+00 : f32
    %111 = vector.broadcast %cst_58 : f32 to vector<8x256xf32>
    %112 = arith.maximumf %110, %111 : vector<8x256xf32>
    %c0_59 = arith.constant 0 : index
    %c0_60 = arith.constant 0 : index
    %c0_61 = arith.constant 0 : index
    %113 = vector.load %arg16[%c0_59, %c0_60, %c0_61] : memref<1x1x256xf32, #tpu.memory_space<vmem>>, vector<1x1x256xf32>
    %114 = vector.shape_cast %113 : vector<1x1x256xf32> to vector<1x256xf32>
    %115 = vector.broadcast %114 : vector<1x256xf32> to vector<8x256xf32>
    %116 = arith.mulf %112, %115 : vector<8x256xf32>
    %cst_62 = arith.constant dense<0.000000e+00> : vector<8xf32>
    %117 = vector.multi_reduction <add>, %116, %cst_62 [1] : vector<8x256xf32> to vector<8xf32>
    %118 = vector.shape_cast %117 : vector<8xf32> to vector<8x1xf32>
    %119 = arith.index_cast %arg0 : i32 to index
    %120 = memref.load %arg18[%119] : memref<2xf32, #tpu.memory_space<smem>>
    %121 = vector.broadcast %120 : f32 to vector<8x1xf32>
    %122 = arith.addf %118, %121 : vector<8x1xf32>
    %c0_63 = arith.constant 0 : index
    %c0_64 = arith.constant 0 : index
    %c0_65 = arith.constant 0 : index
    %123 = vector.load %arg17[%c0_63, %c0_64, %c0_65] : memref<1x1x256xf32, #tpu.memory_space<vmem>>, vector<1x1x256xf32>
    %124 = vector.shape_cast %123 : vector<1x1x256xf32> to vector<1x256xf32>
    %125 = vector.broadcast %124 : vector<1x256xf32> to vector<8x256xf32>
    %126 = arith.mulf %112, %125 : vector<8x256xf32>
    %cst_66 = arith.constant dense<0.000000e+00> : vector<8xf32>
    %127 = vector.multi_reduction <add>, %126, %cst_66 [1] : vector<8x256xf32> to vector<8xf32>
    %128 = vector.shape_cast %127 : vector<8xf32> to vector<8x1xf32>
    %129 = arith.index_cast %arg0 : i32 to index
    %130 = memref.load %arg19[%129] : memref<2xf32, #tpu.memory_space<smem>>
    %131 = vector.broadcast %130 : f32 to vector<8x1xf32>
    %132 = arith.addf %128, %131 : vector<8x1xf32>
    %c0_67 = arith.constant 0 : index
    %c0_68 = arith.constant 0 : index
    %133 = vector.load %arg3[%c0_67, %c0_68] : memref<1x128xf32, #tpu.memory_space<vmem>>, vector<1x128xf32>
    %134 = vector.broadcast %122 : vector<8x1xf32> to vector<8x128xf32>
    %135 = vector.broadcast %133 : vector<1x128xf32> to vector<8x128xf32>
    %136 = arith.mulf %134, %135 : vector<8x128xf32>
    %cst_69 = arith.constant 0.000000e+00 : f32
    %137 = vector.broadcast %cst_69 : f32 to vector<8x128xf32>
    %138 = arith.maximumf %136, %137 : vector<8x128xf32>
    %cst_70 = arith.constant -0.0202027075 : f32
    %139 = vector.broadcast %cst_70 : f32 to vector<8x128xf32>
    %140 = arith.mulf %138, %139 : vector<8x128xf32>
    %141 = math.exp %140 : vector<8x128xf32>
    %cst_71 = arith.constant 1.000000e+00 : f32
    %142 = vector.broadcast %cst_71 : f32 to vector<8x128xf32>
    %143 = arith.subf %141, %142 : vector<8x128xf32>
    %cst_72 = arith.constant 1.02040815 : f32
    %144 = vector.broadcast %cst_72 : f32 to vector<8x128xf32>
    %145 = arith.mulf %144, %143 : vector<8x128xf32>
    %146 = vector.broadcast %132 : vector<8x1xf32> to vector<8x128xf32>
    %147 = arith.addf %145, %146 : vector<8x128xf32>
    %c0_73 = arith.constant 0 : index
    %c0_74 = arith.constant 0 : index
    %c0_75 = arith.constant 0 : index
    %148 = vector.load %arg20[%c0_73, %c0_74, %c0_75] : memref<1x8x128xf32, #tpu.memory_space<vmem>>, vector<1x8x128xf32>
    %149 = vector.shape_cast %148 : vector<1x8x128xf32> to vector<8x128xf32>
    %150 = vector.shape_cast %147 : vector<8x128xf32> to vector<1x8x128xf32>
    tpu.vector_store %arg20[%c0_73, %c0_74, %c0_75], %150 {strides = array<i32>} : memref<1x8x128xf32, #tpu.memory_space<vmem>>, vector<1x8x128xf32>,
    return
  }
  func.func @transform_0(%arg0: i32, %arg1: i32) -> (i32, i32) {
    %c0_i32 = arith.constant 0 : i32
    %c0_i32_0 = arith.constant 0 : i32
    return %arg1, %c0_i32 : i32, i32
  }
  func.func @transform_1(%arg0: i32, %arg1: i32) -> (i32, i32) {
    %c0_i32 = arith.constant 0 : i32
    %c0_i32_0 = arith.constant 0 : i32
    %c0_i32_1 = arith.constant 0 : i32
    return %c0_i32, %c0_i32_0 : i32, i32
  }
  func.func @transform_2(%arg0: i32, %arg1: i32) -> (i32, i32, i32) {
    %c0_i32 = arith.constant 0 : i32
    %c0_i32_0 = arith.constant 0 : i32
    %c0_i32_1 = arith.constant 0 : i32
    return %arg0, %c0_i32, %c0_i32_0 : i32, i32, i32
  }
  func.func @transform_3(%arg0: i32, %arg1: i32) -> (i32, i32, i32) {
    %c0_i32 = arith.constant 0 : i32
    %c0_i32_0 = arith.constant 0 : i32
    %c0_i32_1 = arith.constant 0 : i32
    return %arg0, %c0_i32, %c0_i32_0 : i32, i32, i32
  }
  func.func @transform_4(%arg0: i32, %arg1: i32) -> (i32, i32, i32) {
    %c0_i32 = arith.constant 0 : i32
    %c0_i32_0 = arith.constant 0 : i32
    %c0_i32_1 = arith.constant 0 : i32
    return %arg0, %c0_i32, %c0_i32_0 : i32, i32, i32
  }
  func.func @transform_5(%arg0: i32, %arg1: i32) -> (i32, i32, i32) {
    %c0_i32 = arith.constant 0 : i32
    %c0_i32_0 = arith.constant 0 : i32
    %c0_i32_1 = arith.constant 0 : i32
    return %arg0, %c0_i32, %c0_i32_0 : i32, i32, i32
  }
  func.func @transform_6(%arg0: i32, %arg1: i32) -> (i32, i32, i32) {
    %c0_i32 = arith.constant 0 : i32
    %c0_i32_0 = arith.constant 0 : i32
    %c0_i32_1 = arith.constant 0 : i32
    return %arg0, %c0_i32, %c0_i32_0 : i32, i32, i32
  }
  func.func @transform_7(%arg0: i32, %arg1: i32) -> (i32, i32, i32) {
    %c0_i32 = arith.constant 0 : i32
    %c0_i32_0 = arith.constant 0 : i32
    %c0_i32_1 = arith.constant 0 : i32
    return %arg0, %c0_i32, %c0_i32_0 : i32, i32, i32
  }
  func.func @transform_8(%arg0: i32, %arg1: i32) -> (i32, i32, i32) {
    %c0_i32 = arith.constant 0 : i32
    %c0_i32_0 = arith.constant 0 : i32
    %c0_i32_1 = arith.constant 0 : i32
    return %arg0, %c0_i32, %c0_i32_0 : i32, i32, i32
  }
  func.func @transform_9(%arg0: i32, %arg1: i32) -> (i32, i32, i32) {
    %c0_i32 = arith.constant 0 : i32
    %c0_i32_0 = arith.constant 0 : i32
    %c0_i32_1 = arith.constant 0 : i32
    return %arg0, %c0_i32, %c0_i32_0 : i32, i32, i32
  }
  func.func @transform_10(%arg0: i32, %arg1: i32) -> (i32, i32, i32) {
    %c0_i32 = arith.constant 0 : i32
    %c0_i32_0 = arith.constant 0 : i32
    %c0_i32_1 = arith.constant 0 : i32
    return %arg0, %c0_i32, %c0_i32_0 : i32, i32, i32
  }
  func.func @transform_11(%arg0: i32, %arg1: i32) -> (i32, i32, i32) {
    %c0_i32 = arith.constant 0 : i32
    %c0_i32_0 = arith.constant 0 : i32
    %c0_i32_1 = arith.constant 0 : i32
    return %arg0, %c0_i32, %c0_i32_0 : i32, i32, i32
  }
  func.func @transform_12(%arg0: i32, %arg1: i32) -> (i32, i32, i32) {
    %c0_i32 = arith.constant 0 : i32
    %c0_i32_0 = arith.constant 0 : i32
    %c0_i32_1 = arith.constant 0 : i32
    return %arg0, %c0_i32, %c0_i32_0 : i32, i32, i32
  }
  func.func @transform_13(%arg0: i32, %arg1: i32) -> (i32, i32, i32) {
    %c0_i32 = arith.constant 0 : i32
    %c0_i32_0 = arith.constant 0 : i32
    %c0_i32_1 = arith.constant 0 : i32
    return %arg0, %c0_i32, %c0_i32_0 : i32, i32, i32
  }
  func.func @transform_14(%arg0: i32, %arg1: i32) -> (i32, i32, i32) {
    %c0_i32 = arith.constant 0 : i32
    %c0_i32_0 = arith.constant 0 : i32
    %c0_i32_1 = arith.constant 0 : i32
    return %arg0, %c0_i32, %c0_i32_0 : i32, i32, i32
  }
  func.func @transform_15(%arg0: i32, %arg1: i32) -> (i32, i32, i32) {
    %c0_i32 = arith.constant 0 : i32
    %c0_i32_0 = arith.constant 0 : i32
    %c0_i32_1 = arith.constant 0 : i32
    return %arg0, %c0_i32, %c0_i32_0 : i32, i32, i32
  }
  func.func @transform_16(%arg0: i32, %arg1: i32) -> i32 {
    %c0_i32 = arith.constant 0 : i32
    %c0_i32_0 = arith.constant 0 : i32
    return %c0_i32 : i32
  }
  func.func @transform_17(%arg0: i32, %arg1: i32) -> i32 {
    %c0_i32 = arith.constant 0 : i32
    %c0_i32_0 = arith.constant 0 : i32
    return %c0_i32 : i32
  }
  func.func @transform_18(%arg0: i32, %arg1: i32) -> (i32, i32, i32) {
    %c0_i32 = arith.constant 0 : i32
    %c0_i32_0 = arith.constant 0 : i32
    return %arg0, %arg1, %c0_i32 : i32, i32, i32
  }
}

</mosaic_0001>

<bundles_post_ra>
// kernel: tpu_custom_call.1
= control target key start
LH: loop header
LB: loop body
LE: loop exit
PB: predicated region body
PF: predicated region fallthrough
CT: control target
= control target key end

     0   :  { %s3109_s0 = inlined_call_operand.vmem [shape: f32[24,20], index: 0, kind: input, shape index: {}]   ;;  %s3110_s1 = inlined_call_operand.vmem [shape: f32[1,128], index: 1, kind: input, shape index: {}]   ;;  %s3111_s2 = inlined_call_operand.vmem [shape: f32[2,1,20], index: 2, kind: input, shape index: {}]   ;;  %s3112_s3 = inlined_call_operand.vmem [shape: f32[2,1,20], index: 3, kind: input, shape index: {}]   ;;  %s3113_s4 = inlined_call_operand.vmem [shape: bf16[2,20,256], index: 4, kind: input, shape index: {}]   ;;  %s3114_s5 = inlined_call_operand.vmem [shape: f32[2,1,256], index: 5, kind: input, shape index: {}]   ;;  %s3115_s6 = inlined_call_operand.vmem [shape: f32[2,1,256], index: 6, kind: input, shape index: {}]   ;;  %s3116_s7 = inlined_call_operand.vmem [shape: f32[2,1,256], index: 7, kind: input, shape index: {}]   ;;  %s3117_s8 = inlined_call_operand.hbm [shape: bf16[2,256,256], index: 8, kind: input, shape index: {}]   ;;  %s3118_s9 = inlined_call_operand.vmem [shape: f32[2,1,256], index: 9, kind: input, shape index: {}]   ;;  %s3119_s10 = inlined_call_operand.vmem [shape: f32[2,1,256], index: 10, kind: input, shape index: {}]   ;;  %s3120_s11 = inlined_call_operand.vmem [shape: f32[2,1,256], index: 11, kind: input, shape index: {}]   ;;  %s3121_s12 = inlined_call_operand.hbm [shape: bf16[2,256,256], index: 12, kind: input, shape index: {}]   ;;  %s3122_s13 = inlined_call_operand.vmem [shape: f32[2,1,256], index: 13, kind: input, shape index: {}]   ;;  %s3123_s14 = inlined_call_operand.vmem [shape: f32[2,1,256], index: 14, kind: input, shape index: {}]   ;;  %s3124_s15 = inlined_call_operand.vmem [shape: f32[2,1,256], index: 15, kind: input, shape index: {}]   ;;  %s3125_s16 = inlined_call_operand.vmem [shape: f32[2], index: 16, kind: input, shape index: {}]   ;;  %s3126_s17 = inlined_call_operand.vmem [shape: f32[2], index: 17, kind: input, shape index: {}]   ;;  %s3127_s18 = inlined_call_operand.hbm [shape: f32[2,24,128], index: 18, kind: output, shape index: {}]  }
   0x1   :  { %3147 = sst [smem:[#allocation26_spill]] %s3109_s0 }
   0x2   :  { %3148 = sst [smem:[#allocation27_spill]] %s3110_s1 }
   0x3   :  { %3149 = sst [smem:[#allocation28_spill]] %s3111_s2 }
   0x4   :  { %3150 = sst [smem:[#allocation29_spill]] %s3116_s7 }
   0x5   :  { %3151 = sst [smem:[#allocation30_spill]] %s3117_s8 }
   0x6   :  { %3152 = sst [smem:[#allocation31_spill]] %s3118_s9 }
   0x7   :  { %3153 = sst [smem:[#allocation32_spill]] %s3119_s10 }
   0x8   :  { %3154 = sst [smem:[#allocation33_spill]] %s3120_s11 }
   0x9   :  { %3155 = sst [smem:[#allocation34_spill]] %s3122_s13 }
   0xa   :  { %3156 = sst [smem:[#allocation35_spill]] %s3123_s14 }
   0xb   :  { %3157 = sst [smem:[#allocation36_spill]] %s3124_s15 }
   0xc   :  { %3158 = sst [smem:[#allocation37_spill]] %s3125_s16 }
   0xd   :  { %3159 = sst [smem:[#allocation38_spill]] %s3126_s17 }
   0xe   :  { %3160 = sst [smem:[#allocation39_spill]] %s3127_s18 }
   0xf   :  { %23 = vsyncpa [#allocation3], 0 }
  0x10   :  { %25 = vsyncpa [#allocation3 + $0x1], 0 }
  0x11   :  { %26 = vsyncpa [#allocation7], 0 }
  0x12   :  { %28 = vsyncpa [#allocation7 + $0x1], 0 }
  0x13   :  { %29 = vsyncpa [#allocation5], 0 }
  0x14   :  { %30 = vsyncpa [#allocation10], 0 }
  0x15   :  { %31 = vsyncpa [#allocation4], 0 }
  0x16   :  { %33 = vsyncpa [#allocation4 + $0x1], 0  ;;  %s2636_s27 = smov 0   ;;  %s2638_s28 = smov 0  }
  0x17   :  { %s2640_s29 = smov 0   ;;  %s2642_s30 = smov 0  }
  0x18   :  { %s2644_s0 = smov 0   ;;  %s2646_s19 = smov 0  }
  0x19   :  { %s2648_s1 = smov 0   ;;  %s2650_s20 = smov 0  }
  0x1a   :  { %s2652_s21 = smov 0   ;;  %s2654_s22 = smov 0  }
  0x1b   :  { %s2656_s2 = smov 0  }
  0x1c LB: > { %3161 = sst [smem:[#allocation17_spill]] %s2491_s27  ;;  %s1955_s23 = sadd.s32 4294967295, %s2531_s2   ;;  %s2531_s2 = sphi %s2656_s2, %s39_s2   ;;  %s2527_s22 = sphi %s2654_s22, %s3220_s22   ;;  %s2523_s21 = sphi %s2652_s21, %s3219_s21   ;;  %s2519_s20 = sphi %s2650_s20, %s3218_s20   ;;  %s2515_s1 = sphi %s2648_s1, %s3210_s1   ;;  %s2511_s19 = sphi %s2646_s19, %s3217_s19   ;;  %s2507_s0 = sphi %s2644_s0, %s3216_s0   ;;  %s2503_s30 = sphi %s2642_s30, %s3215_s30   ;;  %s2499_s29 = sphi %s2640_s29, %s3214_s29   ;;  %s2495_s28 = sphi %s2638_s28, %s3213_s28   ;;  %s2491_s27 = sphi %s2636_s27, %s3207_s27  }
  0x1d   : > { %3162 = sst [smem:[#allocation18_spill]] %s2495_s28  ;;  %s1956_s24 = sadd.s32 4294967294, %s2531_s2  }
  0x1e   : > { %3163 = sst [smem:[#allocation19_spill]] %s2523_s21  ;;  %p268_p0 = scmp.ne.s32.totalorder %s2511_s19, %s2507_s0 }
  0x1f   : > { %3164 = sst [smem:[#allocation20_spill]] %s2531_s2  ;;  %p269_p1 = scmp.eq.s32.totalorder %s2531_s2, 0 }
  0x20   : > { %p274_p2 = scmp.ne.s32.totalorder %s2507_s0, %s2503_s30  ;;  %p2696_p3 = scmp.eq.s32.totalorder %s1955_s23, 0 }
  0x21   : > { %p2701_p4 = por %p269_p1, %p268_p0  ;;  %p523_p5 = scmp.ne.s32.totalorder %s2499_s29, %s2495_s28 }
  0x22   : > { %s3165_s26 = scalar_select %p2696_p3, 1, 0 }
  0x23   : > { %p2709_p6 = por %p2696_p3, %p274_p2  ;;  %p524_p7 = scmp.eq.s32.totalorder %s1955_s23, 5 }
  0x24   : > { %p529_p8 = scmp.ne.s32.totalorder %s2495_s28, %s2491_s27  ;;  %p530_p9 = scmp.eq.s32.totalorder %s1956_s24, 5 }
  0x25   : > { %s3167_s25 = scalar_select %p2709_p6, 1, 0 }
  0x26   : > { %p2715_p10 = por %p524_p7, %p523_p5  ;;  %p1957_p11 = scmp.ge.s32.totalorder %s2531_s2, 1 }
  0x27   : > { %p2720_p12 = por %p530_p9, %p529_p8  ;;  %p537_p13 = scmp.lt.s32.totalorder %s2531_s2, 7 }
  0x28   : > { %s3168_s30 = scalar_select %p2715_p10, 1, 0 }
  0x29   : > { %s3170_s18 = scalar_select %p2720_p12, 1, 0 }
  0x2a   : > { %3169 = sst [smem:[#allocation21_spill]] %s3168_s30  ;;  %s3172_s16 = sld [smem:[#allocation37_spill]] }
  0x2b   : > { %3171 = sst [smem:[#allocation22_spill]] %s3170_s18  ;;  %p2728_p0 = pnand %p1957_p11, %p537_p13 }
  0x2c   : > { %p2101_p2 = scmp.lt.s32.totalorder %s2531_s2, 6  ;;  %s3174_s17 = sld [smem:[#allocation38_spill]] }
  0x2d   : > { %s3173_s10 = scalar_select %p2728_p0, 1, 0 }
  0x2e   : > { %p2081_p1 = pneg %p2728_p0  ;;  %p2746_p7 = pnand %p2101_p2, %p2701_p4 }
  0x30   : > { %s553_s11 = sshll.u32 %s3172_s16, 4  ;;  %p2740_p5 = pnand %p2081_p1, %p2696_p3  ;;  %s554_s11 = int_to_ptr.vmem [resolvable:$true] %s553_s11 }
  0x31   : > { %s3176_s13 = scalar_select %p2746_p7, 1, 0 }
  0x32   : > { %s564_s27 = sshll.u32 %s3174_s17, 4  ;;  %s2307_s14 = scalar_lea.vmem %s554_s11, 16  ;;  %s565_s27 = int_to_ptr.vmem [resolvable:$true] %s564_s27 }
  0x33   : > { %p2308_p8 = scmp.ne.s32.totalorder %s554_s11, %s2307_s14  ;;  %p2309_p9 = pneg %p2740_p5 }
  0x34   : > { %p2315_p12 = scmp.lt.s32.totalorder %s554_s11, %s554_s11  ;;  %p2316_p10 = scmp.lt.s32.totalorder %s2307_s14, %s2307_s14 }
  0x35   : > { %p2310_p11 = pnand %p2309_p9, %p2308_p8 }
  0x36   : > { %p2317_p6 = por %p2316_p10, %p2315_p12 }
  0x37   : > { %p2311_p13 = pneg %p2310_p11 }
  0x39   : > { %p2318_p1 = pnand %p2317_p6, %p2311_p13 }
  0x3b   : > { %2321 = shalt.err (!%p2318_p1)
}
  0x3c   : > { %s2533_s23 = smov [#allocation8]   ;;  %s2322_s15 = scalar_lea.vmem %s565_s27, 16 }
  0x3d   : > { %2084 = dma.vmem_to_smem (!%p2740_p5), %s554_s11, 16, %s2533_s23, [#allocation5]  }
  0x3e   : > { %p2323_p4 = scmp.ne.s32.totalorder %s565_s27, %s2322_s15  ;;  %p2330_p0 = scmp.lt.s32.totalorder %s565_s27, %s565_s27 }
  0x3f   : > { %p2331_p7 = scmp.lt.s32.totalorder %s2322_s15, %s2322_s15 }
  0x40   : > { %p2325_p2 = pnand %p2323_p4, %p2309_p9 }
  0x41   : > { %p2332_p8 = por %p2331_p7, %p2330_p0 }
  0x42   : > { %p2326_p3 = pneg %p2325_p2 }
  0x44   : > { %p2333_p11 = pnand %p2332_p8, %p2326_p3 }
  0x46   : > { %2336 = shalt.err (!%p2333_p11)
}
  0x47   : > { %s2534_s24 = smov [#allocation9]   ;;  %s48_s11 = sadd.s32 1, %s2523_s21 }
  0x48   : > { %2087 = dma.vmem_to_smem (!%p2740_p5), %s565_s27, 16, %s2534_s24, [#allocation10]  }
  0x49   : > { %p49_p6 = scmp.ge.s32.totalorder %s48_s11, 3  ;;  %s51_s14 = sadd.s32 1, %s2527_s22 }
  0x4a   : > { %s2759_s23 = sand.u32 1, %s2511_s19   ;;  %s3143_s15 = sshll.u32 %s2527_s22, 12 }
  0x4b   : > { %s3222_s11 = smov (%p49_p6, %s48_s11), 0  ;;  %s3224_s14 = smov (!%p49_p6, %s51_s14), %s2527_s22 }
  0x4c   : > { %3177 = sst [smem:[#allocation23_spill]] %s3222_s11  ;;  %s509_s18 = ssub.s32 %s2523_s21, %s3222_s11 }
  0x4d   : > { %p53_p3 = scmp.ge.s32.totalorder %s3224_s14, 2  ;;  %s3145_s27 = sshll.u32 %s2759_s23, 8 }
  0x4e   : > { %s3178_s8 = sld [smem:[#allocation30_spill]]  ;;  %s627_s2 = scalar_lea.vmem [#allocation2], %s3145_s27 }
  0x4f   : > { %s3226_s14 = smov (%p53_p3, %s3224_s14), 0  ;;  %s634_s30 = sshll.u32 %s627_s2, 4  ;;  %s2781_s30 = int_to_ptr.vmem [resolvable:$true] %s634_s30 }
  0x50   : > { %3179 = sst [smem:[#allocation24_spill]] %s3226_s14  ;;  %s258_s11 = ssub.s32 %s2527_s22, %s3226_s14 }
  0x51   : > { %p259_p10 = scmp.eq.s32.totalorder %s258_s11, 0  ;;  %s510_s21 = sor.u32 %s509_s18, %s258_s11 }
  0x52   : > { %p511_p12 = scmp.eq.s32.totalorder %s510_s21, 0  ;;  %s3180_s16 = sadd.s32 1, %s2511_s19 }
  0x53   : > { %s2786_s24 = scalar_select %p259_p10, %s2511_s19, %s3180_s16  }
  0x54   : > { %s2773_s17 = scalar_lea.hbm %s3178_s8, %s3143_s15  ;;  %s3182_s15 = sadd.s32 1, %s2499_s29 }
  0x55   : > { %3181 = sst [smem:[#allocation25_spill]] %s2786_s24  ;;  %s624_s9 = scalar_lea.sflag [#allocation3], %s2759_s23 }
  0x56   : > { %s2791_s28 = scalar_select %p511_p12, %s2499_s29, %s3182_s15  }
  0x57   : > { %s2337_s7 = scalar_lea.hbm %s2773_s17, 4096  ;;  %p3183_p5 = scmp.ne.s32.totalorder %s3176_s13, 0 }
  0x58   : > { %p2338_p0 = scmp.ne.s32.totalorder %s2773_s17, %s2337_s7  ;;  %s2342_s11 = scalar_lea.hbm %s3178_s8, 8192 }
  0x59   : > { %p2339_p7 = pneg %p3183_p5  ;;  %p2343_p1 = scmp.lt.u32.totalorder %s2773_s17, %s3178_s8 }
  0x5a   : > { %p2344_p4 = scmp.lt.u32.totalorder %s2342_s11, %s2337_s7  ;;  %p2346_p8 = scmp.lt.u32.totalorder %s2337_s7, %s2773_s17 }
  0x5b   : > { %p2340_p9 = pnand %p2339_p7, %p2338_p0 }
  0x5c   : > { %p2345_p2 = por %p2344_p4, %p2343_p1 }
  0x5d   : > { %p2341_p13 = pneg %p2340_p9 }
  0x5e   : > { %p2347_p11 = por %p2346_p8, %p2345_p2 }
  0x60   : > { %p2348_p6 = pnand %p2347_p11, %p2341_p13 }
  0x62   : > { %2351 = shalt.err (!%p2348_p6)
}
  0x63   : > { %s2352_s15 = scalar_lea.vmem %s2781_s30, 4096  ;;  %s2535_s27 = smov [#allocation2]  }
  0x64   : > { %p2353_p3 = scmp.ne.s32.totalorder %s2781_s30, %s2352_s15  ;;  %s2357_s16 = sshll.u32 %s2535_s27, 4  ;;  %s2358_s16 = int_to_ptr.vmem [resolvable:$false] %s2357_s16 }
  0x65   : > { %s2359_s2 = scalar_lea.vmem %s2358_s16, 8192  ;;  %p2360_p0 = scmp.lt.s32.totalorder %s2781_s30, %s2358_s16 }
  0x66   : > { %p2355_p10 = pnand %p2353_p3, %p2339_p7  ;;  %p2361_p9 = scmp.lt.s32.totalorder %s2359_s2, %s2352_s15 }
  0x68   : > { %p2356_p12 = pneg %p2355_p10  ;;  %p2362_p1 = por %p2361_p9, %p2360_p0 }
  0x6a   : > { %p2363_p4 = pnand %p2362_p1, %p2356_p12 }
  0x6c   : > { %2366 = shalt.err (!%p2363_p4)
}
  0x6d   : > { %s2536_s7 = smov 128   ;;  %s2537_s11 = smov 8  }
  0x6e   : > { %2091 = dma.hbm_to_vmem [thread:$0]  (!%p3183_p5), %s2773_s17, 4096, %s2781_s30, %s624_s9, %s2536_s7, %s2536_s7, %s2537_s11  }
  0x6f   : > { %s3184_s21 = sshll.u32 %s2527_s22, 12  ;;  %s3185_s16 = sshll.u32 %s2759_s23, 8 }
  0x70   : > { %s2829_s27 = scalar_lea.hbm %s3121_s12, %s3184_s21  ;;  %s669_s2 = scalar_lea.vmem [#allocation6], %s3185_s16 }
  0x71   : > { %s676_s8 = sshll.u32 %s669_s2, 4  ;;  %s666_s14 = scalar_lea.sflag [#allocation7], %s2759_s23  ;;  %s2833_s8 = int_to_ptr.vmem [resolvable:$true] %s676_s8 }
  0x72   : > { %s2367_s24 = scalar_lea.hbm %s2829_s27, 4096  ;;  %s2372_s30 = scalar_lea.hbm %s3121_s12, 8192 }
  0x73   : > { %p2368_p13 = scmp.ne.s32.totalorder %s2829_s27, %s2367_s24  ;;  %p2373_p11 = scmp.lt.u32.totalorder %s2829_s27, %s3121_s12 }
  0x74   : > { %p2374_p6 = scmp.lt.u32.totalorder %s2372_s30, %s2367_s24  ;;  %p2376_p10 = scmp.lt.u32.totalorder %s2367_s24, %s2829_s27 }
  0x75   : > { %p2370_p2 = pnand %p2368_p13, %p2339_p7 }
  0x76   : > { %p2375_p3 = por %p2374_p6, %p2373_p11 }
  0x77   : > { %p2371_p8 = pneg %p2370_p2 }
  0x78   : > { %p2377_p12 = por %p2376_p10, %p2375_p3 }
  0x7a   : > { %p2378_p0 = pnand %p2377_p12, %p2371_p8 }
  0x7c   : > { %2381 = shalt.err (!%p2378_p0)
}
  0x7d   : > { %s2382_s15 = scalar_lea.vmem %s2833_s8, 4096  ;;  %s2538_s16 = smov [#allocation6]  }
  0x7e   : > { %p2383_p9 = scmp.ne.s32.totalorder %s2833_s8, %s2382_s15  ;;  %s2387_s2 = sshll.u32 %s2538_s16, 4  ;;  %s2388_s2 = int_to_ptr.vmem [resolvable:$false] %s2387_s2 }
  0x7f   : > { %s2389_s9 = scalar_lea.vmem %s2388_s2, 8192  ;;  %p2390_p13 = scmp.lt.s32.totalorder %s2833_s8, %s2388_s2 }
  0x80   : > { %p2385_p1 = pnand %p2383_p9, %p2339_p7  ;;  %p2391_p2 = scmp.lt.s32.totalorder %s2389_s9, %s2382_s15 }
  0x82   : > { %p2386_p4 = pneg %p2385_p1  ;;  %p2392_p11 = por %p2391_p2, %p2390_p13 }
  0x84   : > { %p2393_p6 = pnand %p2392_p11, %p2386_p4 }
  0x86   : > { %2396 = shalt.err (!%p2393_p6)
}
  0x87   : > { %2094 = dma.hbm_to_vmem [thread:$0]  (!%p3183_p5), %s2829_s27, 4096, %s2833_s8, %s666_s14, %s2536_s7, %s2536_s7, %s2537_s11  }
  0x88   : > { %p3186_p7 = scmp.ne.s32.totalorder %s3173_s10, 0 }
  0x89   : > { %s711_s24 = sand.u32 (!%p3186_p7), 1, %s2507_s0   ;;  %p3187_p8 = scmp.ne.s32.totalorder (!%p3186_p7), %s3167_s25, 0 }
  0x8a   : > { %709 = sbr.rel (%p3186_p7) target bundleno = 1521 (0x5f1), region = 92  ;;  %s1968_s17 = sshll.u32 (!%p3186_p7), %s711_s24, 8 }
  0x8b   : > { %s712_s30 = scalar_lea.sflag (!%p3186_p7), [#allocation3], %s711_s24  ;;  %s2867_s21 = scalar_lea.vmem (!%p3186_p7), [#allocation2], %s1968_s17 }
  0x91   : > { %2470 = dma.done.wait (%p3187_p8), %s712_s30, 4096  }
  0x92   : > { %2472 = vsyncadd (%p3187_p8), %s712_s30, 4294963200  ;;  %s721_s13 = scalar_lea.sflag [#allocation7], %s711_s24  ;;  %s2873_s23 = scalar_lea.vmem [#allocation6], %s1968_s17 }
  0x93   : > { %2474 = dma.done.wait (%p3187_p8), %s721_s13, 4096  }
  0x94   : > { %2476 = vsyncadd (%p3187_p8), %s721_s13, 4294963200  ;;  %p3188_p5 = scmp.ne.s32.totalorder %s3165_s26, 0 }
  0x96   : > { %2478 = dma.done.wait (%p3188_p5), [#allocation5], 16  }
  0x97   : > { %2480 = vsyncadd (%p3188_p5), [#allocation5], 4294967280 }
  0x98   : > { %2482 = dma.done.wait (%p3188_p5), [#allocation10], 16  }
  0x99   : > { %2484 = vsyncadd (%p3188_p5), [#allocation10], 4294967280 }
  0x9a   : > { %737 = sfence }
  0x9b   : > { %p842_p3 = scmp.lt.s32.totalorder %s2515_s1, 2  ;;  %vm897_vm0 = vcmask 162816   ;;  %s3189_s7 = sld [smem:[#allocation26_spill]]  ;;  %v2539_v4 = vmov 0   ;;  %vm964_vm1 = vcmask 1041408   ;;  %v936_v45 = vlaneseq }
  0x9c   : > { %p846_p10 = scmp.lt.s32.totalorder %s2519_s20, 1  ;;  %1003 = vmatprep.mubr.bf16.mxu0 %v2539_v4  ;;  %s3190_s24 = sld [smem:[#allocation28_spill]]  ;;  %v2203_v27 = vld [vmem:[%s2867_s21 + $0x4] ss:$8 sps:$4 sm:$0xff]   ;;  %v2205_v28 = vld [vmem:[%s2867_s21] ss:$8 sps:$4 sm:$0xff]  }
  0x9d   : > { %s843_s8 = scalar_select %p842_p3, %s2515_s1, 2  ;;  %v2206_v29 = vld [vmem:[%s2867_s21 + $0x14] ss:$8 sps:$4 sm:$0xff]   ;;  %1267 = vmatprep.subr.bf16.mxu1 %v2203_v27  ;;  %v2208_v30 = vld [vmem:[%s2867_s21 + $0x10] ss:$8 sps:$4 sm:$0xff]   ;;  %v937_v46 = vshrl.u32 %v936_v45, 7 }
  0x9e   : > { %s2896_s26 = scalar_select %p846_p10, %s2519_s20, 1  ;;  %1268 = vmatpush1.bf16.msra.mxu1 %v2205_v28  ;;  %v2209_v31 = vld [vmem:[%s2867_s21 + $0x24] ss:$8 sps:$4 sm:$0xff]   ;;  %v2211_v32 = vld [vmem:[%s2867_s21 + $0x20] ss:$8 sps:$4 sm:$0xff]  }
  0x9f   : > { %s1973_s10 = sshll.u32 %s843_s8, 3  ;;  %1269 = vmatprep.subr.bf16.mxu1 %v2206_v29  ;;  %v2212_v33 = vld [vmem:[%s2867_s21 + $0x34] ss:$8 sps:$4 sm:$0xff]   ;;  %v2214_v34 = vld [vmem:[%s2867_s21 + $0x30] ss:$8 sps:$4 sm:$0xff]   ;;  %v2936_v47 = vsub.s32 0, %v937_v46 }
  0xa0   : > { %s2065_s27 = smul.u32 24, %s2896_s26  ;;  %s851_s8 = scalar_lea.vmem %s3112_s3, %s2896_s26  ;;  %v2215_v35 = vld [vmem:[%s2867_s21 + $0x44] ss:$8 sps:$4 sm:$0xff]   ;;  %v2217_v36 = vld [vmem:[%s2867_s21 + $0x40] ss:$8 sps:$4 sm:$0xff]   ;;  %v2938_v49 = vsub.s32 1, %v937_v46 }
  0xa1   : > { %s845_s11 = scalar_lea.vmem %s3189_s7, %s1973_s10  ;;  %v1985_v22 = vld [vmem:[%s851_s8] ss:$0 sm:$0xff]  ;;  %v2218_v37 = vld [vmem:[%s2867_s21 + $0x54] ss:$8 sps:$4 sm:$0xff]   ;;  %v2220_v38 = vld [vmem:[%s2867_s21 + $0x50] ss:$8 sps:$4 sm:$0xff]  }
  0xa2   : > { %v894_v0 = vld [vmem:[%s845_s11] sm:$0xff]  ;;  %s856_s16 = scalar_lea.vmem %s3113_s4, %s2065_s27  ;;  %s848_s17 = scalar_lea.vmem %s3190_s24, %s2896_s26  ;;  %1270 = vmatpush1.bf16.msra.mxu1 %v2208_v30  ;;  %v2224_v41 = vld [vmem:[%s2867_s21 + $0x74] ss:$8 sps:$4 sm:$0xff]   ;;  %v2226_v42 = vld [vmem:[%s2867_s21 + $0x70] ss:$8 sps:$4 sm:$0xff]  }
  0xa3   : > { %v898_v1 = vsel %vm897_vm0, %v894_v0, 0.0  ;;  %v903_v2 = vmul.f32 %v894_v0, %v894_v0  ;;  %v933_v5 = vld [vmem:[%s856_s16 + $0x10] sm:$0x33]  ;;  %v2198_v6 = vld [vmem:[%s856_s16 + $0x4] ss:$8 sps:$4 sm:$0xff]   ;;  %1271 = vmatprep.subr.bf16.mxu1 %v2209_v31  ;;  %s2930_s10 = sshll.u32 %s2896_s26, 1 }
  0xa4   : > { %899 = vadd.xlane.f32.xlu0 %v898_v1  ;;  %v1990_v7 = vcombine.high %v933_v5, %v933_v5  ;;  %v2201_v8 = vld [vmem:[%s856_s16] ss:$8 sps:$4 sm:$0xff]   ;;  %v1989_v9 = vcombine.low %v933_v5, %v933_v5  ;;  %971 = vmatprep.subr.bf16.mxu0 %v2198_v6  ;;  %v2221_v39 = vld [vmem:[%s2867_s21 + $0x64] ss:$8 sps:$4 sm:$0xff]   ;;  %s860_s7 = scalar_lea.vmem %s3114_s5, %s2930_s10  ;;  %v2232_v1 = vld [vmem:[%s2867_s21 + $0x90] ss:$8 sps:$4 sm:$0xff]   ;;  %s864_s27 = scalar_lea.vmem %s3115_s6, %s2930_s10 }
  0xa5   : > { %v904_v3 = vsel %vm897_vm0, %v903_v2, 0.0  ;;  %972 = vmatpush1.bf16.msra.mxu0 %v2201_v8  ;;  %v1984_v20 = vld [vmem:[%s848_s17] ss:$0 sm:$0xff]  ;;  %v2227_v43 = vld [vmem:[%s2867_s21 + $0x84] ss:$8 sps:$4 sm:$0xff]   ;;  %s3191_s16 = sld [smem:[#allocation29_spill]] }
  0xa6   : > { %1991 = vmatprep.subr.msk.bf16.mxu0 %vm964_vm1, %v1990_v7  ;;  %v966_v10 = vsel %vm964_vm1, %v1989_v9, 0  ;;  %1272 = vmatpush1.bf16.msra.mxu1 %v2211_v32  ;;  %v2223_v40 = vld [vmem:[%s2867_s21 + $0x60] ss:$8 sps:$4 sm:$0xff]   ;;  %v2233_v2 = vld [vmem:[%s2867_s21 + $0xa4] ss:$8 sps:$4 sm:$0xff]   ;;  %s3192_s24 = sld [smem:[#allocation31_spill]] }
  0xa7   : > { %1273 = vmatprep.subr.bf16.mxu1 %v2212_v33  ;;  %v2229_v44 = vld [vmem:[%s2867_s21 + $0x80] ss:$8 sps:$4 sm:$0xff]   ;;  %v2236_v4 = vld [vmem:[%s2867_s21 + $0xb4] ss:$8 sps:$4 sm:$0xff]   ;;  %v2238_v5 = vld [vmem:[%s2867_s21 + $0xb0] ss:$8 sps:$4 sm:$0xff]  }
  0xa8   : > { %905 = vadd.xlane.f32.xlu0 %v904_v3  ;;  %v934_v48 = vld [vmem:[%s860_s7] sm:$0x3]  ;;  %v2239_v6 = vld [vmem:[%s2867_s21 + $0xc4] ss:$8 sps:$4 sm:$0xff]   ;;  %v2242_v8 = vld [vmem:[%s2867_s21 + $0xd4] ss:$8 sps:$4 sm:$0xff]  }
  0xa9   : > { %974 = vmatpush1.bf16.msra.mxu0 %v966_v10  ;;  %v939_v50 = vrot.slane %v934_v48, %v2936_v47  ;;  %v943_v51 = vrot.slane %v934_v48, %v2938_v49  ;;  %v2235_v3 = vld [vmem:[%s2867_s21 + $0xa0] ss:$8 sps:$4 sm:$0xff]   ;;  %v2244_v9 = vld [vmem:[%s2867_s21 + $0xd0] ss:$8 sps:$4 sm:$0xff]   ;;  %v2245_v10 = vld [vmem:[%s2867_s21 + $0xe4] ss:$8 sps:$4 sm:$0xff]  }
  0xaa   : > { %1274 = vmatpush1.bf16.msra.mxu1 %v2214_v34  ;;  %v2241_v7 = vld [vmem:[%s2867_s21 + $0xc0] ss:$8 sps:$4 sm:$0xff]   ;;  %v2260_v45 = vld [vmem:[%s2873_s23 + $0x30] ss:$8 sps:$4 sm:$0xff]   ;;  %v2265_v46 = vld [vmem:[%s2873_s23 + $0x44] ss:$8 sps:$4 sm:$0xff]  }
  0xab   : > { %1275 = vmatprep.subr.bf16.mxu1 %v2215_v35  ;;  %s868_s2 = scalar_lea.vmem %s3191_s16, %s2930_s10  ;;  %v2263_v48 = vld [vmem:[%s2873_s23 + $0x40] ss:$8 sps:$4 sm:$0xff]   ;;  %s3193_s8 = sld [smem:[#allocation32_spill]] }
  0xac   : > { %s872_s17 = scalar_lea.vmem %s3192_s24, %s2930_s10  ;;  %s3194_s11 = sld [smem:[#allocation33_spill]] }
  0xad   : > { %s3195_s18 = sld [smem:[#allocation34_spill]]  ;;  %s3197_s30 = sld [smem:[#allocation36_spill]] }
  0xae   : > { %1276 = vmatpush1.bf16.msra.mxu1 %v2217_v36  ;;  %s3199_s7 = sld [smem:[#allocation27_spill]] }
  0xaf   : > { %1277 = vmatprep.subr.bf16.mxu1 %v2218_v37 }
  0xb1   : > { %s876_s25 = scalar_lea.vmem %s3193_s8, %s2930_s10  ;;  %s1622_s8 = sld [smem:[#allocation8 + %s2519_s20]] }
  0xb2   : > { %1278 = vmatpush1.bf16.msra.mxu1 %v2220_v38  ;;  %v2251_v38 = vld [vmem:[%s2873_s23] ss:$8 sps:$4 sm:$0xff]   ;;  %s880_s26 = scalar_lea.vmem %s3194_s11, %s2930_s10  ;;  %s1642_s11 = sld [smem:[#allocation9 + %s2519_s20]] }
  0xb3   : > { %1279 = vmatprep.subr.bf16.mxu1 %v2221_v39  ;;  %v2253_v39 = vld [vmem:[%s2873_s23 + $0x4] ss:$8 sps:$4 sm:$0xff]   ;;  %s884_s15 = scalar_lea.vmem %s3195_s18, %s2930_s10  ;;  %s892_s13 = scalar_lea.vmem %s3197_s30, %s2930_s10 }
  0xb4   : > { %1562 = vmatprep.subr.bf16.mxu0 %v2253_v39 }
  0xb6   : > { %1280 = vmatpush1.bf16.msra.mxu1 %v2223_v40  ;;  %v2256_v40 = vld [vmem:[%s2873_s23 + $0x14] ss:$8 sps:$4 sm:$0xff]  }
  0xb7   : > { %1281 = vmatprep.subr.bf16.mxu1 %v2224_v41  ;;  %v2254_v41 = vld [vmem:[%s2873_s23 + $0x10] ss:$8 sps:$4 sm:$0xff]  }
  0xba   : > { %1282 = vmatpush1.bf16.msra.mxu1 %v2226_v42  ;;  %v2259_v42 = vld [vmem:[%s2873_s23 + $0x24] ss:$8 sps:$4 sm:$0xff]  }
  0xbb   : > { %1283 = vmatprep.subr.bf16.mxu1 %v2227_v43  ;;  %v2257_v43 = vld [vmem:[%s2873_s23 + $0x20] ss:$8 sps:$4 sm:$0xff]  }
  0xbe   : > { %1284 = vmatpush1.bf16.msra.mxu1 %v2229_v44  ;;  %v2262_v44 = vld [vmem:[%s2873_s23 + $0x34] ss:$8 sps:$4 sm:$0xff]  }
 0x131   : > { %v900_v11 = vpop.xlane.xlu0 %899 }
 0x132   : > { %v902_v12 = vmul.f32 0.05, %v900_v11  ;;  %v2247_v11 = vld [vmem:[%s2867_s21 + $0xe0] ss:$8 sps:$4 sm:$0xff]  }
 0x134   : > { %v908_v14 = vmul.f32 %v902_v12, %v902_v12  ;;  %v910_v18 = vsub.f32 %v894_v0, %v902_v12  ;;  %v2230_v0 = vld [vmem:[%s2867_s21 + $0x94] ss:$8 sps:$4 sm:$0xff]  }
 0x135   : > { %v906_v13 = vpop.xlane.xlu0 %905  ;;  %1285 = vmatprep.subr.bf16.mxu1 %v2230_v0  ;;  %v2248_v12 = vld [vmem:[%s2867_s21 + $0xf4] ss:$8 sps:$4 sm:$0xff]  }
 0x136   : > { %v907_v15 = vmul.f32 0.05, %v906_v13  ;;  %1286 = vmatpush1.bf16.msra.mxu1 %v2232_v1  ;;  %v2250_v13 = vld [vmem:[%s2867_s21 + $0xf0] ss:$8 sps:$4 sm:$0xff]   ;;  %s3196_s21 = sld [smem:[#allocation35_spill]] }
 0x137   : > { %1287 = vmatprep.subr.bf16.mxu1 %v2233_v2 }
 0x138   : > { %v909_v16 = vsub.f32 %v907_v15, %v908_v14 }
 0x13a   : > { %v911_v17 = vadd.f32 1e-05, %v909_v16  ;;  %1288 = vmatpush1.bf16.msra.mxu1 %v2235_v3 }
 0x13b   : > { %1289 = vmatprep.subr.bf16.mxu1 %v2236_v4 }
 0x13c   : > { %2299 = vrsqrt.f32 %v911_v17  ;;  %s888_s9 = scalar_lea.vmem %s3196_s21, %s2930_s10  ;;  %s3198_s10 = sld [smem:[#allocation18_spill]] }
 0x13e   : > { %1290 = vmatpush1.bf16.msra.mxu1 %v2238_v5 }
 0x13f   : > { %1291 = vmatprep.subr.bf16.mxu1 %v2239_v6 }
 0x142   : > { %1292 = vmatpush1.bf16.msra.mxu1 %v2241_v7 }
 0x143   : > { %1293 = vmatprep.subr.bf16.mxu1 %v2242_v8 }
 0x146   : > { %v2300_v19 = vpop.eup %2299  ;;  %1294 = vmatpush1.bf16.msra.mxu1 %v2244_v9  ;;  %v2280_v9 = vld [vmem:[%s2873_s23 + $0x94] ss:$8 sps:$4 sm:$0xff]  }
 0x147   : > { %v913_v21 = vmul.f32 %v2300_v19, %v910_v18  ;;  %1295 = vmatprep.subr.bf16.mxu1 %v2245_v10  ;;  %v2278_v10 = vld [vmem:[%s2873_s23 + $0x90] ss:$8 sps:$4 sm:$0xff]  }
 0x149   : > { %v920_v23 = vmul.f32 %v1984_v20, %v913_v21  ;;  %v1014_v21 = vld [vmem:[%s864_s27] sm:$0x3] }
 0x14a   : > { %1296 = vmatpush1.bf16.msra.mxu1 %v2247_v11  ;;  %v2283_v11 = vld [vmem:[%s2873_s23 + $0xa4] ss:$8 sps:$4 sm:$0xff]  }
 0x14b   : > { %v927_v24 = vadd.f32 %v1985_v22, %v920_v23  ;;  %1297 = vmatprep.subr.bf16.mxu1 %v2248_v12  ;;  %v1015_v22 = vld [vmem:[%s868_s2] sm:$0x3] }
 0x14c   : > { %v1052_v29 = vrot.slane %v1015_v22, %v2936_v47  ;;  %v1056_v30 = vrot.slane %v1015_v22, %v2938_v49  ;;  %v2281_v12 = vld [vmem:[%s2873_s23 + $0xa0] ss:$8 sps:$4 sm:$0xff]   ;;  %v2296_v22 = vld [vmem:[%s2873_s23 + $0xf0] ss:$8 sps:$4 sm:$0xff]  }
 0x14d   : > { %v1986_v25 = vclamps-f32 %v927_v24, 3.0 }
 0x14e   : > { %1298 = vmatpush1.bf16.msra.mxu1 %v2250_v13  ;;  %v2286_v13 = vld [vmem:[%s2873_s23 + $0xb4] ss:$8 sps:$4 sm:$0xff]  }
 0x14f   : > { %v930_v26 = vpack.c.bf16 %v1986_v25, %v1986_v25  ;;  %v1039_v25 = vrot.slane %v1014_v21, %v2936_v47 }
 0x151   : > { %1992 = vmatmul.mubr.msk.bf16.vlgmr.msra.gmra.mrb[0].mxu0 %vm897_vm0, %v930_v26  ;;  %v1043_v26 = vrot.slane %v1014_v21, %v2938_v49  ;;  %v2298_v21 = vld [vmem:[%s2873_s23 + $0xf4] ss:$8 sps:$4 sm:$0xff]  }
 0x152   : > { %1563 = vmatpush1.bf16.msra.mxu0 %v2251_v38 }
 0x153   : > { %1564 = vmatprep.subr.bf16.mxu0 %v2256_v40 }
 0x156   : > { %1565 = vmatpush1.bf16.msra.mxu0 %v2254_v41 }
 0x157   : > { %1566 = vmatprep.subr.bf16.mxu0 %v2259_v42 }
 0x15a   : > { %1567 = vmatpush1.bf16.msra.mxu0 %v2257_v43 }
 0x15b   : > { %1568 = vmatprep.subr.bf16.mxu0 %v2262_v44 }
 0x15e   : > { %1569 = vmatpush1.bf16.msra.mxu0 %v2260_v45 }
 0x15f   : > { %1570 = vmatprep.subr.bf16.mxu0 %v2265_v46 }
 0x162   : > { %1571 = vmatpush1.bf16.msra.mxu0 %v2263_v48  ;;  %v1390_v48 = vld [vmem:[%s884_s15] sm:$0x3]  ;;  %s3200_s15 = sld [smem:[#allocation21_spill]] }
 0x168   : > { %p3202_p0 = scmp.ne.s32.totalorder %s3200_s15, 0 }
 0x224   : > { %v1005_v52 = vpop.f32.mrb[0].mxu0 }
 0x225   : > { %v1006_v53 = vadd.f32 %v1005_v52, %v939_v50  ;;  %v1007_v54 = vpop.f32.mrb[1].mxu0  ;;  %v2268_v50 = vld [vmem:[%s2873_s23 + $0x54] ss:$8 sps:$4 sm:$0xff]   ;;  %v2271_v52 = vld [vmem:[%s2873_s23 + $0x64] ss:$8 sps:$4 sm:$0xff]  }
 0x226   : > { %v1008_v55 = vadd.f32 %v1007_v54, %v943_v51  ;;  %v1009_v56 = vpop.f32.mrb[2].mxu0  ;;  %v2266_v51 = vld [vmem:[%s2873_s23 + $0x50] ss:$8 sps:$4 sm:$0xff]   ;;  %1572 = vmatprep.subr.bf16.mxu0 %v2268_v50  ;;  %v2274_v54 = vld [vmem:[%s2873_s23 + $0x74] ss:$8 sps:$4 sm:$0xff]   ;;  %v1395_v50 = vrot.slane %v1390_v48, %v2936_v47 }
 0x227   : > { %v1012_v57 = vmax.f32 %v1006_v53, 0.0  ;;  %v1010_v58 = vpop.f32.mrb[3].mxu0  ;;  %1573 = vmatpush1.bf16.msra.mxu0 %v2266_v51  ;;  %v2269_v53 = vld [vmem:[%s2873_s23 + $0x60] ss:$8 sps:$4 sm:$0xff]   ;;  %v2277_v56 = vld [vmem:[%s2873_s23 + $0x84] ss:$8 sps:$4 sm:$0xff]  }
 0x228   : > { %v1013_v59 = vmax.f32 %v1008_v55, 0.0  ;;  %1574 = vmatprep.subr.bf16.mxu0 %v2271_v52  ;;  %v2272_v55 = vld [vmem:[%s2873_s23 + $0x70] ss:$8 sps:$4 sm:$0xff]   ;;  %v1095_v58 = vld [vmem:[%s872_s17] sm:$0x3]  ;;  %s3201_s17 = sld [smem:[#allocation39_spill]] }
 0x229   : > { %v1021_v61 = vmul.f32 %v1012_v57, %v1012_v57  ;;  %v1605_v51 = vld [vmem:[%s888_s9] sm:$0x3] }
 0x22a   : > { %v1016_v60 = vadd.f32 %v1013_v59, %v1012_v57  ;;  %v1022_v62 = vmul.f32 %v1013_v59, %v1013_v59  ;;  %v1625_v52 = vld [vmem:[%s892_s13] sm:$0x3]  ;;  %s2540_s13 = smov [#allocation11]  }
 0x22b   : > { %1575 = vmatpush1.bf16.msra.mxu0 %v2269_v53  ;;  %v1399_v53 = vrot.slane %v1390_v48, %v2938_v49 }
 0x22c   : > { %1017 = vadd.xlane.f32.xlu1 %v1016_v60  ;;  %v1023_v63 = vadd.f32 %v1022_v62, %v1021_v61  ;;  %1576 = vmatprep.subr.bf16.mxu0 %v2274_v54  ;;  %v1104_v60 = vrot.slane %v1095_v58, %v2938_v49 }
 0x22f   : > { %1577 = vmatpush1.bf16.msra.mxu0 %v2272_v55 }
 0x230   : > { %1024 = vadd.xlane.f32.xlu1 %v1023_v63  ;;  %1578 = vmatprep.subr.bf16.mxu0 %v2277_v56  ;;  %v1610_v56 = vrot.slane %v1605_v51, %v2936_v47 }
 0x2b9   : > { %v1018_v14 = vpop.xlane.xlu1 %1017 }
 0x2ba   : > { %v1020_v15 = vmul.f32 0.00390625, %v1018_v14  ;;  %v2284_v14 = vld [vmem:[%s2873_s23 + $0xb0] ss:$8 sps:$4 sm:$0xff]  }
 0x2bc   : > { %v1027_v17 = vmul.f32 %v1020_v15, %v1020_v15  ;;  %v1029_v23 = vsub.f32 %v1012_v57, %v1020_v15  ;;  %v1030_v24 = vsub.f32 %v1013_v59, %v1020_v15  ;;  %v2275_v57 = vld [vmem:[%s2873_s23 + $0x80] ss:$8 sps:$4 sm:$0xff]   ;;  %v1100_v59 = vrot.slane %v1095_v58, %v2936_v47  ;;  %v2289_v15 = vld [vmem:[%s2873_s23 + $0xc4] ss:$8 sps:$4 sm:$0xff]  }
 0x2bd   : > { %v1025_v16 = vpop.xlane.xlu1 %1024  ;;  %1579 = vmatpush1.bf16.msra.mxu0 %v2275_v57  ;;  %v1630_v57 = vrot.slane %v1625_v52, %v2936_v47 }
 0x2be   : > { %v1026_v18 = vmul.f32 0.00390625, %v1025_v16  ;;  %1580 = vmatprep.subr.bf16.mxu0 %v2280_v9  ;;  %v2287_v16 = vld [vmem:[%s2873_s23 + $0xc0] ss:$8 sps:$4 sm:$0xff]  }
 0x2c0   : > { %v1028_v19 = vsub.f32 %v1026_v18, %v1027_v17  ;;  %v2292_v17 = vld [vmem:[%s2873_s23 + $0xd4] ss:$8 sps:$4 sm:$0xff]   ;;  %v2290_v18 = vld [vmem:[%s2873_s23 + $0xd0] ss:$8 sps:$4 sm:$0xff]  }
 0x2c1   : > { %1581 = vmatpush1.bf16.msra.mxu0 %v2278_v10 }
 0x2c2   : > { %v1031_v20 = vadd.f32 1e-05, %v1028_v19  ;;  %1582 = vmatprep.subr.bf16.mxu0 %v2283_v11  ;;  %v2295_v19 = vld [vmem:[%s2873_s23 + $0xe4] ss:$8 sps:$4 sm:$0xff]  }
 0x2c4   : > { %2301 = vrsqrt.f32 %v1031_v20  ;;  %v2293_v20 = vld [vmem:[%s2873_s23 + $0xe0] ss:$8 sps:$4 sm:$0xff]   ;;  %s2066_s23 = smul.u32 3, %s2519_s20 }
 0x2c5   : > { %1583 = vmatpush1.bf16.msra.mxu0 %v2281_v12 }
 0x2c6   : > { %1584 = vmatprep.subr.bf16.mxu0 %v2286_v13  ;;  %s1673_s18 = sadd.s32 %s2515_s1, %s2066_s23 }
 0x2c7   : > { %s2060_s16 = sshll.u32 %s1673_s18, 7 }
 0x2c8   : > { %s3047_s30 = scalar_lea.hbm %s3201_s17, %s2060_s16 }
 0x2c9   : > { %1585 = vmatpush1.bf16.msra.mxu0 %v2284_v14 }
 0x2ca   : > { %1586 = vmatprep.subr.bf16.mxu0 %v2289_v15  ;;  %v1643_v15 = vstv %s1642_s11 }
 0x2cd   : > { %1587 = vmatpush1.bf16.msra.mxu0 %v2287_v16 }
 0x2ce   : > { %v2302_v27 = vpop.eup %2301  ;;  %1588 = vmatprep.subr.bf16.mxu0 %v2292_v17 }
 0x2cf   : > { %v1034_v28 = vmul.f32 %v2302_v27, %v1030_v24  ;;  %v1033_v31 = vmul.f32 %v2302_v27, %v1029_v23 }
 0x2d1   : > { %v1047_v32 = vmul.f32 %v1043_v26, %v1034_v28  ;;  %v1046_v33 = vmul.f32 %v1039_v25, %v1033_v31  ;;  %1589 = vmatpush1.bf16.msra.mxu0 %v2290_v18  ;;  %v1311_v31 = vld [vmem:[%s880_s26] sm:$0x3]  ;;  %s839_s26 = sand.u32 1, %s3198_s10   ;;  %s2401_s10 = sshll.u32 %s2540_s13, 4  ;;  %s2402_s10 = int_to_ptr.vmem [resolvable:$false] %s2401_s10 }
 0x2d2   : > { %1590 = vmatprep.subr.bf16.mxu0 %v2295_v19  ;;  %v1347_v38 = vrot.slane %v1311_v31, %v2936_v47  ;;  %v1351_v39 = vrot.slane %v1311_v31, %v2938_v49  ;;  %s1972_s27 = sshll.u32 %s839_s26, 3  ;;  %s1662_s1 = scalar_lea.sflag [#allocation4], %s839_s26 }
 0x2d3   : > { %v1060_v34 = vadd.f32 %v1056_v30, %v1047_v32  ;;  %v1059_v35 = vadd.f32 %v1052_v29, %v1046_v33  ;;  %v1310_v30 = vld [vmem:[%s876_s25] sm:$0x3]  ;;  %s841_s2 = scalar_lea.vmem [#allocation11], %s1972_s27 }
 0x2d4   : > { %s1677_s21 = sshll.u32 %s841_s2, 4  ;;  %s3049_s21 = int_to_ptr.vmem [resolvable:$true] %s1677_s21 }
 0x2d5   : > { %v1062_v36 = vpack.c.bf16 %v1060_v34, %v1060_v34  ;;  %v1061_v37 = vpack.c.bf16 %v1059_v35, %v1059_v35  ;;  %1591 = vmatpush1.bf16.msra.mxu0 %v2293_v20  ;;  %v1334_v34 = vrot.slane %v1310_v30, %v2936_v47  ;;  %v1338_v35 = vrot.slane %v1310_v30, %v2938_v49  ;;  %s2397_s20 = scalar_lea.vmem %s3049_s21, 128  ;;  %p2404_p4 = scmp.lt.s32.totalorder %s3049_s21, %s2402_s10 }
 0x2d6   : > { %1592 = vmatprep.subr.bf16.mxu0 %v2298_v21  ;;  %p2398_p12 = scmp.ne.s32.totalorder %s3049_s21, %s2397_s20 }
 0x2d7   : > { %1299 = vmatprep.mubr.bf16.mxu1 %v1062_v36 }
 0x2d8   : > { %1300 = vmatmul.mubr.bf16.vlgmr.msra.gmra.mrb[0].mxu1 %v1061_v37  ;;  %p2399_p9 = pnand %p2398_p12, %p3202_p0 }
 0x2d9   : > { %1593 = vmatpush1.bf16.msra.mxu0 %v2296_v22 }
 0x2da   : > { %p2400_p1 = pneg %p2399_p9 }
 0x3ab   : > { %v1301_v61 = vpop.f32.mrb[0].mxu1 }
 0x3ac   : > { %v1302_v62 = vadd.f32 %v1301_v61, %v1100_v59  ;;  %v1303_v63 = vpop.f32.mrb[1].mxu1  ;;  %v1634_v61 = vrot.slane %v1625_v52, %v2938_v49 }
 0x3ad   : > { %v1304_v0 = vadd.f32 %v1303_v63, %v1104_v60  ;;  %v1305_v1 = vpop.f32.mrb[2].mxu1  ;;  %v1614_v60 = vrot.slane %v1605_v51, %v2938_v49  ;;  %v2057_v49 = vld [vmem:[%s3199_s7] ss:$0 sm:$0xff] }
 0x3ae   : > { %v1308_v2 = vmax.f32 %v1302_v62, 0.0  ;;  %v1306_v3 = vpop.f32.mrb[3].mxu1 }
 0x3af   : > { %v1309_v4 = vmax.f32 %v1304_v0, 0.0 }
 0x3b0   : > { %v1316_v5 = vmul.f32 %v1308_v2, %v1308_v2 }
 0x3b1   : > { %v1312_v6 = vadd.f32 %v1309_v4, %v1308_v2  ;;  %v1317_v7 = vmul.f32 %v1309_v4, %v1309_v4 }
 0x3b3   : > { %1313 = vadd.xlane.f32.xlu0 %v1312_v6  ;;  %v1318_v8 = vadd.f32 %v1317_v7, %v1316_v5  ;;  %v1623_v7 = vstv %s1622_s8  ;;  %s2403_s8 = scalar_lea.vmem %s2402_s10, 256 }
 0x3b4   : > { %p2405_p13 = scmp.lt.s32.totalorder %s2403_s8, %s2397_s20 }
 0x3b5   : > { %1319 = vadd.xlane.f32.xlu1 %v1318_v8 }
 0x3b6   : > { %p2406_p2 = por %p2405_p13, %p2404_p4 }
 0x3b8   : > { %p2407_p11 = pnand %p2406_p2, %p2400_p1 }
 0x440   : > { %v1314_v23 = vpop.xlane.xlu0 %1313 }
 0x441   : > { %v1315_v24 = vmul.f32 0.00390625, %v1314_v23 }
 0x442   : > { %v1320_v25 = vpop.xlane.xlu1 %1319 }
 0x443   : > { %v1321_v26 = vmul.f32 0.00390625, %v1320_v25  ;;  %v1322_v27 = vmul.f32 %v1315_v24, %v1315_v24  ;;  %v1324_v32 = vsub.f32 %v1308_v2, %v1315_v24  ;;  %v1325_v33 = vsub.f32 %v1309_v4, %v1315_v24 }
 0x445   : > { %v1323_v28 = vsub.f32 %v1321_v26, %v1322_v27 }
 0x447   : > { %v1326_v29 = vadd.f32 1e-05, %v1323_v28 }
 0x449   : > { %2303 = vrsqrt.f32 %v1326_v29 }
 0x453   : > { %v2304_v36 = vpop.eup %2303 }
 0x454   : > { %v1329_v37 = vmul.f32 %v2304_v36, %v1325_v33  ;;  %v1328_v40 = vmul.f32 %v2304_v36, %v1324_v32 }
 0x456   : > { %v1342_v41 = vmul.f32 %v1338_v35, %v1329_v37  ;;  %v1341_v42 = vmul.f32 %v1334_v34, %v1328_v40 }
 0x458   : > { %v1355_v43 = vadd.f32 %v1351_v39, %v1342_v41  ;;  %v1354_v44 = vadd.f32 %v1347_v38, %v1341_v42 }
 0x45a   : > { %v1357_v45 = vpack.c.bf16 %v1355_v43, %v1355_v43  ;;  %v1356_v46 = vpack.c.bf16 %v1354_v44, %v1354_v44 }
 0x45c   : > { %1594 = vmatprep.mubr.bf16.mxu0 %v1357_v45 }
 0x45d   : > { %1595 = vmatmul.mubr.bf16.vlgmr.msra.gmra.mrb[4].mxu0 %v1356_v46 }
 0x530   : > { %v1596_v54 = vpop.f32.mrb[4].mxu0 }
 0x531   : > { %v1597_v55 = vadd.f32 %v1596_v54, %v1395_v50  ;;  %v1598_v58 = vpop.f32.mrb[5].mxu0 }
 0x532   : > { %v1599_v59 = vadd.f32 %v1598_v58, %v1399_v53  ;;  %v1600_v62 = vpop.f32.mrb[6].mxu0 }
 0x533   : > { %v1603_v63 = vmax.f32 %v1597_v55, 0.0  ;;  %v1601_v0 = vpop.f32.mrb[7].mxu0 }
 0x534   : > { %v1604_v1 = vmax.f32 %v1599_v59, 0.0 }
 0x535   : > { %v1617_v2 = vmul.f32 %v1610_v56, %v1603_v63  ;;  %v1637_v3 = vmul.f32 %v1630_v57, %v1603_v63 }
 0x536   : > { %v1618_v4 = vmul.f32 %v1614_v60, %v1604_v1  ;;  %v1638_v5 = vmul.f32 %v1634_v61, %v1604_v1 }
 0x538   : > { %v1639_v6 = vadd.f32 %v1638_v5, %v1637_v3  ;;  %v1619_v47 = vadd.f32 %v1618_v4, %v1617_v2 }
 0x53a   : > { %1640 = vadd.xlane.f32.xlu1 %v1639_v6  ;;  %1620 = vadd.xlane.f32.xlu0 %v1619_v47 }
 0x5c7   : > { %v1621_v8 = vpop.xlane.xlu0 %1620  ;;  %v1641_v16 = vpop.xlane.xlu1 %1640 }
 0x5c8   : > { %v1624_v9 = vadd.f32 %v1623_v7, %v1621_v8  ;;  %v1644_v18 = vadd.f32 %v1643_v15, %v1641_v16 }
 0x5ca   : > { %v1652_v10 = vmul.f32 %v2057_v49, %v1624_v9 }
 0x5cc   : > { %v1653_v11 = vmax.f32 %v1652_v10, 0.0 }
 0x5ce   : > { %v1654_v12 = vmul.f32 -0.020202707, %v1653_v11 }
 0x5d0   : > { %v1655_v13 = vmul.f32 1.442695, %v1654_v12 }
 0x5d2   : > { %2305 = vpow2.f32 %v1655_v13 }
 0x5dc   : > { %v2306_v14 = vpop.eup %2305 }
 0x5dd   : > { %v2058_v17 = vadd.f32 -1.0, %v2306_v14 }
 0x5df   : > { %v1658_v19 = vmul.f32 1.0204082, %v2058_v17 }
 0x5e1   : > { %v1659_v20 = vadd.f32 %v1658_v19, %v1644_v18 }
 0x5e3   : > { %1660 = vst [vmem:[%s841_s2] sm:$0xff] %v1659_v20 }
 0x5e4   : > { %2410 = shalt.err (!%p2407_p11)
}
 0x5e5   : > { %s2411_s25 = scalar_lea.hbm %s3047_s30, 128  ;;  %s2415_s11 = scalar_lea.hbm %s3201_s17, 768 }
 0x5e6   : > { %p2412_p6 = scmp.ne.s32.totalorder %s3047_s30, %s2411_s25  ;;  %p2416_p5 = scmp.lt.u32.totalorder %s3047_s30, %s3201_s17 }
 0x5e7   : > { %p2417_p3 = scmp.lt.u32.totalorder %s2415_s11, %s2411_s25  ;;  %p2419_p12 = scmp.lt.u32.totalorder %s2411_s25, %s3047_s30 }
 0x5e8   : > { %p2413_p7 = pnand %p2412_p6, %p3202_p0 }
 0x5e9   : > { %p2418_p10 = por %p2417_p3, %p2416_p5 }
 0x5ea   : > { %p2414_p8 = pneg %p2413_p7 }
 0x5eb   : > { %p2420_p9 = por %p2419_p12, %p2418_p10 }
 0x5ed   : > { %p2421_p1 = pnand %p2420_p9, %p2414_p8 }
 0x5ef   : > { %2424 = shalt.err (!%p2421_p1)
}
 0x5f0   : > { %2079 = dma.vmem_to_hbm [thread:$0]  (%p3202_p0), %s3049_s21, 128, %s3047_s30, %s1662_s1  }
 0x5f1 PF: > { %s3203_s27 = sld [smem:[#allocation20_spill]]  ;;  %s3204_s18 = sld [smem:[#allocation17_spill]] }
 0x5f2   : > { %s3205_s16 = sld [smem:[#allocation22_spill]] }
 0x5f7   : > { %p2104_p4 = scmp.ge.s32.totalorder %s3203_s27, 2  ;;  %s1689_s2 = sand.u32 1, %s3204_s18  }
 0x5f8   : > { %p3206_p13 = scmp.ne.s32.totalorder %s3205_s16, 0  ;;  %s1690_s9 = scalar_lea.sflag [#allocation4], %s1689_s2 }
 0x5fa   : > { %p2096_p2 = pnand %p2104_p4, %p3206_p13 }
 0x5fc   : > { %2486 = dma.done.wait (!%p2096_p2), %s1690_s9, 128  }
 0x5fd   : > { %2488 = vsyncadd (!%p2096_p2), %s1690_s9, 4294967168  ;;  %s39_s2 = sadd.s32 1, %s3203_s27   ;;  %s3207_s27 = sld [smem:[#allocation18_spill]] }
 0x5fe   : > { %p36_p11 = scmp.ge.s32.totalorder %s39_s2, 8   ;;  %s3208_s15 = smov %s2791_s28 }
 0x5ff   : > { %s3209_s21 = sld [smem:[#allocation25_spill]]  ;;  %s3210_s1 = sld [smem:[#allocation19_spill]] }
 0x600   : > { %s3211_s24 = sld [smem:[#allocation23_spill]]  ;;  %s3212_s13 = sld [smem:[#allocation24_spill]] }
 0x601   : > { %s3213_s28 = smov %s2499_s29  ;;  %s3214_s29 = smov %s3208_s15 }
 0x602   : > { %s3215_s30 = smov %s2507_s0  ;;  %s3216_s0 = smov %s2511_s19 }
 0x603   : > { %s3218_s20 = smov %s2527_s22  ;;  %38 = sbr.rel (!%p36_p11) target bundleno = 28 (0x1c), region = 198 }
 0x605   : > { %s3217_s19 = smov %s3209_s21 }
 0x606   : > { %s3219_s21 = smov %s3211_s24  ;;  %s3220_s22 = smov %s3212_s13 }
 0x60a   :  { %1695 = vsyncpa [#allocation3], 1 }
 0x60b   :  { %1697 = vsyncpa [#allocation3 + $0x1], 1 }
 0x60c   :  { %1698 = vsyncpa [#allocation7], 1 }
 0x60d   :  { %1700 = vsyncpa [#allocation7 + $0x1], 1 }
 0x60e   :  { %1701 = vsyncpa [#allocation4], 1 }
 0x60f   :  { %1703 = vsyncpa [#allocation4 + $0x1], 1 }
 0x610   :  { %1704 = vsyncpa [#allocation5], 1 }
 0x611   :  { %1706 = vsyncpa [#allocation5 + $0x1], 1 }
 0x612   :  { %1707 = vsyncpa [#allocation10], 1 }

</bundles_post_ra>
